<compile_context>
chip_gen: v5e
topology: v5e:2x2
jax: 0.10.0
libtpu: 0.0.40
codegen_flags: <defaults>
</compile_context>

<pallas_src>
import jax
import jax.numpy as jnp
from jax import lax
from jax.experimental import pallas as pl
from jax.experimental.pallas import tpu as pltpu


def lstm_fc_kernel(x_ref, wih_ref, whh_ref, b_ref, wfc_ref, bfc_ref,
                   out_ref, xp_ref):
    """Single-layer unidirectional LSTM recurrence + final Linear.

    x_ref   : (T, TB, D)     time-major inputs, bf16
    wih_ref : (D, 4*Hp)      fused input->gate weights (i|f|g|o), bf16,
                             i/f/o gate columns pre-scaled by 0.5
    whh_ref : (Hp, 4*Hp)     fused hidden->gate weights, bf16, same scaling
    b_ref   : (1, 4*Hp)      bias_ih + bias_hh, gate-fused + scaled, f32
    wfc_ref : (Hp, Op)       fc weight, pre-transposed + zero-padded, bf16
    bfc_ref : (1, Op)        fc bias, zero-padded, f32
    out_ref : (TB, Op)       fc(h_T), lane-dense (Op = 128-multiple)
    xp_ref  : (T*TB, 4*Hp)   VMEM scratch for the hoisted input projection, bf16
    """
    T, TB, D = x_ref.shape
    Hp = whh_ref.shape[0]

    # --- Hoisted, loop-invariant input projection with fused bias -----------
    # One MXU call for all timesteps; bias paid once; stored bf16.
    x2d = x_ref[...].reshape(T * TB, D)
    xp_ref[...] = (
        jnp.dot(x2d, wih_ref[...], preferred_element_type=jnp.float32)
        + b_ref[...]).astype(jnp.bfloat16)

    whh = whh_ref[...]                       # (Hp, 4*Hp) bf16, resident

    h0 = jnp.zeros((TB, Hp), jnp.float32)
    c0 = jnp.zeros((TB, Hp), jnp.float32)

    def step(t, h, c):
        off = pl.multiple_of(t * TB, TB)     # TB is a multiple of 8
        z = xp_ref[pl.ds(off, TB), :].astype(jnp.float32) + jnp.dot(
            h.astype(jnp.bfloat16), whh, preferred_element_type=jnp.float32)
        # i/f/o pre-activations were pre-scaled by 0.5 in the wrapper, so a
        # single wide tanh covers all 4 gates: sigmoid(x) = 0.5*(tanh(x/2)+1).
        tz = jnp.tanh(z)                                   # (TB, 4*Hp)
        i = 0.5 * tz[:, 0 * Hp:1 * Hp] + 0.5               # gate order i,f,g,o
        f = 0.5 * tz[:, 1 * Hp:2 * Hp] + 0.5
        g = tz[:, 2 * Hp:3 * Hp]
        o = 0.5 * tz[:, 3 * Hp:4 * Hp] + 0.5
        c = f * c + i * g
        h = o * jnp.tanh(c)
        return h, c

    if T <= 32:
        # Static full unroll: full scheduler visibility across the dep chain.
        h, c = h0, c0
        for t in range(T):
            h, c = step(t, h, c)
    else:
        # Bounded unroll keeps vreg pressure / compile time in check at large T.
        h, c = lax.fori_loop(0, T, lambda t, hc: step(t, hc[0], hc[1]),
                             (h0, c0), unroll=4)

    # --- Final Linear on h_T (bf16 operands, f32 accumulation, lane-dense) --
    out_ref[...] = (
        jnp.dot(h.astype(jnp.bfloat16), wfc_ref[...],
                preferred_element_type=jnp.float32) + bfc_ref[...])


def init_params(key, input_dim, hidden_dim, output_dim):
    """Deterministic init mimicking PyTorch's U(-1/sqrt(H), 1/sqrt(H))."""
    k = 1.0 / float(hidden_dim) ** 0.5
    keys = jax.random.split(key, 6)
    w_ih = jax.random.uniform(keys[0], (4 * hidden_dim, input_dim), jnp.float32, -k, k)
    w_hh = jax.random.uniform(keys[1], (4 * hidden_dim, hidden_dim), jnp.float32, -k, k)
    b_ih = jax.random.uniform(keys[2], (4 * hidden_dim,), jnp.float32, -k, k)
    b_hh = jax.random.uniform(keys[3], (4 * hidden_dim,), jnp.float32, -k, k)
    w_fc = jax.random.uniform(keys[4], (output_dim, hidden_dim), jnp.float32, -k, k)
    b_fc = jax.random.uniform(keys[5], (output_dim,), jnp.float32, -k, k)
    return dict(w_ih=w_ih, w_hh=w_hh, b_ih=b_ih, b_hh=b_hh, w_fc=w_fc, b_fc=b_fc)


def lstm_model_forward(x, params, hidden_dim, output_dim, batch_tile=None):
    """x: (B, T, D) batch-first padded inputs (all sequences length T)."""
    B, T, D = x.shape
    H = hidden_dim
    O = output_dim

    # Per-gate width padded to a multiple of 128 lanes (H=40 -> Hp=128), so the
    # fused gate slab is 4*Hp = 512 wide and every gate slice / h / c is a full
    # (8,128) tile. Output padded to Op=128 for an unmasked, lane-dense store.
    Hp = ((H + 127) // 128) * 128
    Op = ((O + 127) // 128) * 128

    # Glue: gate-split, scaled, zero-padded, matmul-ready weights.
    # PyTorch gate order along the 4H axis is i, f, g, o. The i/f/o gates are
    # pre-scaled by 0.5 so the kernel evaluates them with one wide tanh
    # (sigmoid(z) = 0.5 * (tanh(z/2) + 1)).
    gate_scale = jnp.array([0.5, 0.5, 1.0, 0.5], jnp.float32)   # i, f, g, o
    wih_g = params["w_ih"].reshape(4, H, D) * gate_scale[:, None, None]
    whh_g = params["w_hh"].reshape(4, H, H) * gate_scale[:, None, None]
    b_g = (params["b_ih"] + params["b_hh"]).reshape(4, H) * gate_scale[:, None]

    wih_p = jnp.zeros((4, Hp, D), jnp.float32).at[:, :H, :].set(wih_g)
    whh_p = jnp.zeros((4, Hp, Hp), jnp.float32).at[:, :H, :H].set(whh_g)
    b_p = jnp.zeros((4, Hp), jnp.float32).at[:, :H].set(b_g)

    wih_k = wih_p.transpose(2, 0, 1).reshape(D, 4 * Hp).astype(jnp.bfloat16)
    whh_k = whh_p.transpose(2, 0, 1).reshape(Hp, 4 * Hp).astype(jnp.bfloat16)
    b_k = b_p.reshape(1, 4 * Hp)                                 # f32
    wfc_k = (jnp.zeros((Hp, Op), jnp.float32)
             .at[:H, :O].set(params["w_fc"].T).astype(jnp.bfloat16))
    bfc_k = jnp.zeros((1, Op), jnp.float32).at[0, :O].set(params["b_fc"])

    # Time-major, bf16 input stream (halves DMA bytes + VMEM for the x block).
    x_tm = jnp.transpose(x, (1, 0, 2)).astype(jnp.bfloat16)      # (T, B, D)

    # Batch tile: as large as reasonable (amortizes MXU fill/drain and per-grid
    # -step overhead), multiple of 8 so the in-kernel reshape stays layout-free,
    # and >= 2 grid steps when possible so both v7x TensorCores get work.
    if batch_tile is None:
        TB = min(B, 128)
        if B >= 16 and B // TB < 2:
            TB = B // 2
    else:
        TB = min(batch_tile, B)
    assert B % TB == 0, "batch must be a multiple of the batch tile"
    assert TB % 8 == 0, "batch tile must be a multiple of 8 (sublane-aligned)"
    grid = (B // TB,)

    cost = pl.CostEstimate(
        flops=2 * T * B * (D + Hp) * 4 * Hp + 2 * B * Hp * Op,
        transcendentals=5 * T * B * Hp,
        bytes_accessed=(x_tm.size * 2 + wih_k.size * 2 + whh_k.size * 2
                        + wfc_k.size * 2 + b_k.size * 4 + bfc_k.size * 4
                        + B * Op * 4),
    )

    out = pl.pallas_call(
        lstm_fc_kernel,
        out_shape=jax.ShapeDtypeStruct((B, Op), jnp.float32),
        grid=grid,
        in_specs=[
            pl.BlockSpec((T, TB, D), lambda bi: (0, bi, 0)),
            pl.BlockSpec((D, 4 * Hp), lambda bi: (0, 0)),
            pl.BlockSpec((Hp, 4 * Hp), lambda bi: (0, 0)),
            pl.BlockSpec((1, 4 * Hp), lambda bi: (0, 0)),
            pl.BlockSpec((Hp, Op), lambda bi: (0, 0)),
            pl.BlockSpec((1, Op), lambda bi: (0, 0)),
        ],
        out_specs=pl.BlockSpec((TB, Op), lambda bi: (bi, 0)),
        scratch_shapes=[pltpu.VMEM((T * TB, 4 * Hp), jnp.bfloat16)],
        compiler_params=pltpu.CompilerParams(
            dimension_semantics=("parallel",)),
        cost_estimate=cost,
    )(x_tm, wih_k, whh_k, b_k, wfc_k, bfc_k)

    return out[:, :O]


def lstm_model_reference(x, params, hidden_dim, output_dim):
    """Pure-JAX f32 reference of the same forward (for correctness check)."""
    B, T, D = x.shape
    H = hidden_dim
    w_ih, w_hh = params["w_ih"], params["w_hh"]
    b = params["b_ih"] + params["b_hh"]
    h = jnp.zeros((B, H), jnp.float32)
    c = jnp.zeros((B, H), jnp.float32)
    for t in range(T):
        gates = x[:, t, :] @ w_ih.T + h @ w_hh.T + b          # (B, 4H)
        i = jax.nn.sigmoid(gates[:, 0 * H:1 * H])
        f = jax.nn.sigmoid(gates[:, 1 * H:2 * H])
        g = jnp.tanh(gates[:, 2 * H:3 * H])
        o = jax.nn.sigmoid(gates[:, 3 * H:4 * H])
        c = f * c + i * g
        h = o * jnp.tanh(c)
    return h @ params["w_fc"].T + params["b_fc"]


if __name__ == "__main__":
    # Module hyperparameters (from the original script).
    input_dim, hidden_dim, layer_dim, output_dim = 13, 40, 1, 10

    # Small deterministic inputs: batch=16, seq=8, features=13
    # (B=16 -> batch tile 8 -> a 2-step parallel grid).
    key = jax.random.PRNGKey(0)
    k_x, k_p = jax.random.split(key)
    B, T = 16, 8
    x = jax.random.normal(k_x, (B, T, input_dim), dtype=jnp.float32)

    params = init_params(k_p, input_dim, hidden_dim, output_dim)

    out = lstm_model_forward(x, params, hidden_dim, output_dim)
    out = jax.block_until_ready(out)

    ref = lstm_model_reference(x, params, hidden_dim, output_dim)
    assert out.shape == (B, output_dim)
    # Kernel matmuls use bf16 operands (f32 accumulation) and the hoisted input
    # projection is cached in bf16, so compare with a tolerance consistent with
    # bf16 rounding of the gate pre-activations compounding over T steps.
    assert jnp.allclose(out, ref, atol=5e-2, rtol=5e-2), "mismatch vs reference"

    print("KERNEL_OK")
</pallas_src>

<mosaic_0001>
module attributes {stable_mosaic.version = 11 : i64} {
  func.func @lstm_fc_kernel(%arg0: i32, %arg1: memref<8x8x13xbf16, #tpu.memory_space<vmem>>, %arg2: memref<13x512xbf16, #tpu.memory_space<vmem>>, %arg3: memref<128x512xbf16, #tpu.memory_space<vmem>>, %arg4: memref<1x512xf32, #tpu.memory_space<vmem>>, %arg5: memref<128x128xbf16, #tpu.memory_space<vmem>>, %arg6: memref<1x128xf32, #tpu.memory_space<vmem>>, %arg7: memref<8x128xf32, #tpu.memory_space<vmem>>, %arg8: memref<64x512xbf16, #tpu.memory_space<vmem>>) attributes {dimension_semantics = [#tpu.dimension_semantics<parallel>], iteration_bounds = array<i64: 2>, scalar_prefetch = 0 : i64, scratch_operands = 1 : i64, tpu.core_type = #tpu.core_type<tc>, window_params = [{transform_indices = @transform_0, window_bounds = array<i64: 8, 8, 13>}, {pipeline_mode = #tpu.pipeline_mode<synchronous>, transform_indices = @transform_1, window_bounds = array<i64: 13, 512>}, {pipeline_mode = #tpu.pipeline_mode<synchronous>, transform_indices = @transform_2, window_bounds = array<i64: 128, 512>}, {pipeline_mode = #tpu.pipeline_mode<synchronous>, transform_indices = @transform_3, window_bounds = array<i64: 1, 512>}, {pipeline_mode = #tpu.pipeline_mode<synchronous>, transform_indices = @transform_4, window_bounds = array<i64: 128, 128>}, {pipeline_mode = #tpu.pipeline_mode<synchronous>, transform_indices = @transform_5, window_bounds = array<i64: 1, 128>}, {transform_indices = @transform_6, window_bounds = array<i64: 8, 128>}]} {
    %c0 = arith.constant 0 : index
    %c0_0 = arith.constant 0 : index
    %c0_1 = arith.constant 0 : index
    %0 = vector.load %arg1[%c0, %c0_0, %c0_1] : memref<8x8x13xbf16, #tpu.memory_space<vmem>>, vector<8x8x13xbf16>
    %1 = vector.shape_cast %0 : vector<8x8x13xbf16> to vector<64x13xbf16>
    %c0_2 = arith.constant 0 : index
    %c0_3 = arith.constant 0 : index
    %2 = vector.load %arg2[%c0_2, %c0_3] : memref<13x512xbf16, #tpu.memory_space<vmem>>, vector<13x512xbf16>
    %cst = arith.constant dense<0.000000e+00> : vector<64x512xf32>
    %3 = tpu.matmul %1, %2, %cst {dimension_numbers = #tpu.dot_dimension_numbers<[1], [0], [0], [1], [0, 0, 1, 1], [], []>} : vector<64x13xbf16>, vector<13x512xbf16>, vector<64x512xf32> -> vector<64x512xf32>
    %c0_4 = arith.constant 0 : index
    %c0_5 = arith.constant 0 : index
    %4 = vector.load %arg4[%c0_4, %c0_5] : memref<1x512xf32, #tpu.memory_space<vmem>>, vector<1x512xf32>
    %5 = vector.broadcast %4 : vector<1x512xf32> to vector<64x512xf32>
    %6 = arith.addf %3, %5 : vector<64x512xf32>
    %7 = arith.truncf %6 : vector<64x512xf32> to vector<64x512xbf16>
    %c0_6 = arith.constant 0 : index
    %c0_7 = arith.constant 0 : index
    %8 = vector.load %arg8[%c0_6, %c0_7] : memref<64x512xbf16, #tpu.memory_space<vmem>>, vector<64x512xbf16>
    tpu.vector_store %arg8[%c0_6, %c0_7], %7 {strides = array<i32>} : memref<64x512xbf16, #tpu.memory_space<vmem>>, vector<64x512xbf16>,
    %c0_8 = arith.constant 0 : index
    %c0_9 = arith.constant 0 : index
    %9 = vector.load %arg3[%c0_8, %c0_9] : memref<128x512xbf16, #tpu.memory_space<vmem>>, vector<128x512xbf16>
    %cst_10 = arith.constant 0.000000e+00 : f32
    %10 = vector.broadcast %cst_10 : f32 to vector<8x128xf32>
    %cst_11 = arith.constant 0.000000e+00 : f32
    %11 = vector.broadcast %cst_11 : f32 to vector<8x128xf32>
    %c0_i32 = arith.constant 0 : i32
    %12 = tpu.assume_multiple %c0_i32, 8 : i32
    %13 = arith.index_cast %12 : i32 to index
    %c0_12 = arith.constant 0 : index
    %14 = vector.load %arg8[%13, %c0_12] : memref<64x512xbf16, #tpu.memory_space<vmem>>, vector<8x512xbf16>
    %15 = arith.extf %14 : vector<8x512xbf16> to vector<8x512xf32>
    %16 = arith.truncf %10 : vector<8x128xf32> to vector<8x128xbf16>
    %cst_13 = arith.constant dense<0.000000e+00> : vector<8x512xf32>
    %17 = tpu.matmul %16, %9, %cst_13 {dimension_numbers = #tpu.dot_dimension_numbers<[1], [0], [0], [1], [0, 0, 1, 1], [], []>} : vector<8x128xbf16>, vector<128x512xbf16>, vector<8x512xf32> -> vector<8x512xf32>
    %18 = arith.addf %15, %17 : vector<8x512xf32>
    %19 = math.tanh %18 : vector<8x512xf32>
    %20 = vector.extract_strided_slice %19 {offsets = [0, 0], sizes = [8, 128], strides = [1, 1]} : vector<8x512xf32> to vector<8x128xf32>
    %cst_14 = arith.constant 5.000000e-01 : f32
    %21 = vector.broadcast %cst_14 : f32 to vector<8x128xf32>
    %22 = arith.mulf %21, %20 : vector<8x128xf32>
    %cst_15 = arith.constant 5.000000e-01 : f32
    %23 = vector.broadcast %cst_15 : f32 to vector<8x128xf32>
    %24 = arith.addf %22, %23 : vector<8x128xf32>
    %25 = vector.extract_strided_slice %19 {offsets = [0, 128], sizes = [8, 128], strides = [1, 1]} : vector<8x512xf32> to vector<8x128xf32>
    %cst_16 = arith.constant 5.000000e-01 : f32
    %26 = vector.broadcast %cst_16 : f32 to vector<8x128xf32>
    %27 = arith.mulf %26, %25 : vector<8x128xf32>
    %cst_17 = arith.constant 5.000000e-01 : f32
    %28 = vector.broadcast %cst_17 : f32 to vector<8x128xf32>
    %29 = arith.addf %27, %28 : vector<8x128xf32>
    %30 = vector.extract_strided_slice %19 {offsets = [0, 256], sizes = [8, 128], strides = [1, 1]} : vector<8x512xf32> to vector<8x128xf32>
    %31 = vector.extract_strided_slice %19 {offsets = [0, 384], sizes = [8, 128], strides = [1, 1]} : vector<8x512xf32> to vector<8x128xf32>
    %cst_18 = arith.constant 5.000000e-01 : f32
    %32 = vector.broadcast %cst_18 : f32 to vector<8x128xf32>
    %33 = arith.mulf %32, %31 : vector<8x128xf32>
    %cst_19 = arith.constant 5.000000e-01 : f32
    %34 = vector.broadcast %cst_19 : f32 to vector<8x128xf32>
    %35 = arith.addf %33, %34 : vector<8x128xf32>
    %36 = arith.mulf %29, %11 : vector<8x128xf32>
    %37 = arith.mulf %24, %30 : vector<8x128xf32>
    %38 = arith.addf %36, %37 : vector<8x128xf32>
    %39 = math.tanh %38 : vector<8x128xf32>
    %40 = arith.mulf %35, %39 : vector<8x128xf32>
    %c8_i32 = arith.constant 8 : i32
    %41 = tpu.assume_multiple %c8_i32, 8 : i32
    %42 = arith.index_cast %41 : i32 to index
    %c0_20 = arith.constant 0 : index
    %43 = vector.load %arg8[%42, %c0_20] : memref<64x512xbf16, #tpu.memory_space<vmem>>, vector<8x512xbf16>
    %44 = arith.extf %43 : vector<8x512xbf16> to vector<8x512xf32>
    %45 = arith.truncf %40 : vector<8x128xf32> to vector<8x128xbf16>
    %cst_21 = arith.constant dense<0.000000e+00> : vector<8x512xf32>
    %46 = tpu.matmul %45, %9, %cst_21 {dimension_numbers = #tpu.dot_dimension_numbers<[1], [0], [0], [1], [0, 0, 1, 1], [], []>} : vector<8x128xbf16>, vector<128x512xbf16>, vector<8x512xf32> -> vector<8x512xf32>
    %47 = arith.addf %44, %46 : vector<8x512xf32>
    %48 = math.tanh %47 : vector<8x512xf32>
    %49 = vector.extract_strided_slice %48 {offsets = [0, 0], sizes = [8, 128], strides = [1, 1]} : vector<8x512xf32> to vector<8x128xf32>
    %cst_22 = arith.constant 5.000000e-01 : f32
    %50 = vector.broadcast %cst_22 : f32 to vector<8x128xf32>
    %51 = arith.mulf %50, %49 : vector<8x128xf32>
    %cst_23 = arith.constant 5.000000e-01 : f32
    %52 = vector.broadcast %cst_23 : f32 to vector<8x128xf32>
    %53 = arith.addf %51, %52 : vector<8x128xf32>
    %54 = vector.extract_strided_slice %48 {offsets = [0, 128], sizes = [8, 128], strides = [1, 1]} : vector<8x512xf32> to vector<8x128xf32>
    %cst_24 = arith.constant 5.000000e-01 : f32
    %55 = vector.broadcast %cst_24 : f32 to vector<8x128xf32>
    %56 = arith.mulf %55, %54 : vector<8x128xf32>
    %cst_25 = arith.constant 5.000000e-01 : f32
    %57 = vector.broadcast %cst_25 : f32 to vector<8x128xf32>
    %58 = arith.addf %56, %57 : vector<8x128xf32>
    %59 = vector.extract_strided_slice %48 {offsets = [0, 256], sizes = [8, 128], strides = [1, 1]} : vector<8x512xf32> to vector<8x128xf32>
    %60 = vector.extract_strided_slice %48 {offsets = [0, 384], sizes = [8, 128], strides = [1, 1]} : vector<8x512xf32> to vector<8x128xf32>
    %cst_26 = arith.constant 5.000000e-01 : f32
    %61 = vector.broadcast %cst_26 : f32 to vector<8x128xf32>
    %62 = arith.mulf %61, %60 : vector<8x128xf32>
    %cst_27 = arith.constant 5.000000e-01 : f32
    %63 = vector.broadcast %cst_27 : f32 to vector<8x128xf32>
    %64 = arith.addf %62, %63 : vector<8x128xf32>
    %65 = arith.mulf %58, %38 : vector<8x128xf32>
    %66 = arith.mulf %53, %59 : vector<8x128xf32>
    %67 = arith.addf %65, %66 : vector<8x128xf32>
    %68 = math.tanh %67 : vector<8x128xf32>
    %69 = arith.mulf %64, %68 : vector<8x128xf32>
    %c16_i32 = arith.constant 16 : i32
    %70 = tpu.assume_multiple %c16_i32, 8 : i32
    %71 = arith.index_cast %70 : i32 to index
    %c0_28 = arith.constant 0 : index
    %72 = vector.load %arg8[%71, %c0_28] : memref<64x512xbf16, #tpu.memory_space<vmem>>, vector<8x512xbf16>
    %73 = arith.extf %72 : vector<8x512xbf16> to vector<8x512xf32>
    %74 = arith.truncf %69 : vector<8x128xf32> to vector<8x128xbf16>
    %cst_29 = arith.constant dense<0.000000e+00> : vector<8x512xf32>
    %75 = tpu.matmul %74, %9, %cst_29 {dimension_numbers = #tpu.dot_dimension_numbers<[1], [0], [0], [1], [0, 0, 1, 1], [], []>} : vector<8x128xbf16>, vector<128x512xbf16>, vector<8x512xf32> -> vector<8x512xf32>
    %76 = arith.addf %73, %75 : vector<8x512xf32>
    %77 = math.tanh %76 : vector<8x512xf32>
    %78 = vector.extract_strided_slice %77 {offsets = [0, 0], sizes = [8, 128], strides = [1, 1]} : vector<8x512xf32> to vector<8x128xf32>
    %cst_30 = arith.constant 5.000000e-01 : f32
    %79 = vector.broadcast %cst_30 : f32 to vector<8x128xf32>
    %80 = arith.mulf %79, %78 : vector<8x128xf32>
    %cst_31 = arith.constant 5.000000e-01 : f32
    %81 = vector.broadcast %cst_31 : f32 to vector<8x128xf32>
    %82 = arith.addf %80, %81 : vector<8x128xf32>
    %83 = vector.extract_strided_slice %77 {offsets = [0, 128], sizes = [8, 128], strides = [1, 1]} : vector<8x512xf32> to vector<8x128xf32>
    %cst_32 = arith.constant 5.000000e-01 : f32
    %84 = vector.broadcast %cst_32 : f32 to vector<8x128xf32>
    %85 = arith.mulf %84, %83 : vector<8x128xf32>
    %cst_33 = arith.constant 5.000000e-01 : f32
    %86 = vector.broadcast %cst_33 : f32 to vector<8x128xf32>
    %87 = arith.addf %85, %86 : vector<8x128xf32>
    %88 = vector.extract_strided_slice %77 {offsets = [0, 256], sizes = [8, 128], strides = [1, 1]} : vector<8x512xf32> to vector<8x128xf32>
    %89 = vector.extract_strided_slice %77 {offsets = [0, 384], sizes = [8, 128], strides = [1, 1]} : vector<8x512xf32> to vector<8x128xf32>
    %cst_34 = arith.constant 5.000000e-01 : f32
    %90 = vector.broadcast %cst_34 : f32 to vector<8x128xf32>
    %91 = arith.mulf %90, %89 : vector<8x128xf32>
    %cst_35 = arith.constant 5.000000e-01 : f32
    %92 = vector.broadcast %cst_35 : f32 to vector<8x128xf32>
    %93 = arith.addf %91, %92 : vector<8x128xf32>
    %94 = arith.mulf %87, %67 : vector<8x128xf32>
    %95 = arith.mulf %82, %88 : vector<8x128xf32>
    %96 = arith.addf %94, %95 : vector<8x128xf32>
    %97 = math.tanh %96 : vector<8x128xf32>
    %98 = arith.mulf %93, %97 : vector<8x128xf32>
    %c24_i32 = arith.constant 24 : i32
    %99 = tpu.assume_multiple %c24_i32, 8 : i32
    %100 = arith.index_cast %99 : i32 to index
    %c0_36 = arith.constant 0 : index
    %101 = vector.load %arg8[%100, %c0_36] : memref<64x512xbf16, #tpu.memory_space<vmem>>, vector<8x512xbf16>
    %102 = arith.extf %101 : vector<8x512xbf16> to vector<8x512xf32>
    %103 = arith.truncf %98 : vector<8x128xf32> to vector<8x128xbf16>
    %cst_37 = arith.constant dense<0.000000e+00> : vector<8x512xf32>
    %104 = tpu.matmul %103, %9, %cst_37 {dimension_numbers = #tpu.dot_dimension_numbers<[1], [0], [0], [1], [0, 0, 1, 1], [], []>} : vector<8x128xbf16>, vector<128x512xbf16>, vector<8x512xf32> -> vector<8x512xf32>
    %105 = arith.addf %102, %104 : vector<8x512xf32>
    %106 = math.tanh %105 : vector<8x512xf32>
    %107 = vector.extract_strided_slice %106 {offsets = [0, 0], sizes = [8, 128], strides = [1, 1]} : vector<8x512xf32> to vector<8x128xf32>
    %cst_38 = arith.constant 5.000000e-01 : f32
    %108 = vector.broadcast %cst_38 : f32 to vector<8x128xf32>
    %109 = arith.mulf %108, %107 : vector<8x128xf32>
    %cst_39 = arith.constant 5.000000e-01 : f32
    %110 = vector.broadcast %cst_39 : f32 to vector<8x128xf32>
    %111 = arith.addf %109, %110 : vector<8x128xf32>
    %112 = vector.extract_strided_slice %106 {offsets = [0, 128], sizes = [8, 128], strides = [1, 1]} : vector<8x512xf32> to vector<8x128xf32>
    %cst_40 = arith.constant 5.000000e-01 : f32
    %113 = vector.broadcast %cst_40 : f32 to vector<8x128xf32>
    %114 = arith.mulf %113, %112 : vector<8x128xf32>
    %cst_41 = arith.constant 5.000000e-01 : f32
    %115 = vector.broadcast %cst_41 : f32 to vector<8x128xf32>
    %116 = arith.addf %114, %115 : vector<8x128xf32>
    %117 = vector.extract_strided_slice %106 {offsets = [0, 256], sizes = [8, 128], strides = [1, 1]} : vector<8x512xf32> to vector<8x128xf32>
    %118 = vector.extract_strided_slice %106 {offsets = [0, 384], sizes = [8, 128], strides = [1, 1]} : vector<8x512xf32> to vector<8x128xf32>
    %cst_42 = arith.constant 5.000000e-01 : f32
    %119 = vector.broadcast %cst_42 : f32 to vector<8x128xf32>
    %120 = arith.mulf %119, %118 : vector<8x128xf32>
    %cst_43 = arith.constant 5.000000e-01 : f32
    %121 = vector.broadcast %cst_43 : f32 to vector<8x128xf32>
    %122 = arith.addf %120, %121 : vector<8x128xf32>
    %123 = arith.mulf %116, %96 : vector<8x128xf32>
    %124 = arith.mulf %111, %117 : vector<8x128xf32>
    %125 = arith.addf %123, %124 : vector<8x128xf32>
    %126 = math.tanh %125 : vector<8x128xf32>
    %127 = arith.mulf %122, %126 : vector<8x128xf32>
    %c32_i32 = arith.constant 32 : i32
    %128 = tpu.assume_multiple %c32_i32, 8 : i32
    %129 = arith.index_cast %128 : i32 to index
    %c0_44 = arith.constant 0 : index
    %130 = vector.load %arg8[%129, %c0_44] : memref<64x512xbf16, #tpu.memory_space<vmem>>, vector<8x512xbf16>
    %131 = arith.extf %130 : vector<8x512xbf16> to vector<8x512xf32>
    %132 = arith.truncf %127 : vector<8x128xf32> to vector<8x128xbf16>
    %cst_45 = arith.constant dense<0.000000e+00> : vector<8x512xf32>
    %133 = tpu.matmul %132, %9, %cst_45 {dimension_numbers = #tpu.dot_dimension_numbers<[1], [0], [0], [1], [0, 0, 1, 1], [], []>} : vector<8x128xbf16>, vector<128x512xbf16>, vector<8x512xf32> -> vector<8x512xf32>
    %134 = arith.addf %131, %133 : vector<8x512xf32>
    %135 = math.tanh %134 : vector<8x512xf32>
    %136 = vector.extract_strided_slice %135 {offsets = [0, 0], sizes = [8, 128], strides = [1, 1]} : vector<8x512xf32> to vector<8x128xf32>
    %cst_46 = arith.constant 5.000000e-01 : f32
    %137 = vector.broadcast %cst_46 : f32 to vector<8x128xf32>
    %138 = arith.mulf %137, %136 : vector<8x128xf32>
    %cst_47 = arith.constant 5.000000e-01 : f32
    %139 = vector.broadcast %cst_47 : f32 to vector<8x128xf32>
    %140 = arith.addf %138, %139 : vector<8x128xf32>
    %141 = vector.extract_strided_slice %135 {offsets = [0, 128], sizes = [8, 128], strides = [1, 1]} : vector<8x512xf32> to vector<8x128xf32>
    %cst_48 = arith.constant 5.000000e-01 : f32
    %142 = vector.broadcast %cst_48 : f32 to vector<8x128xf32>
    %143 = arith.mulf %142, %141 : vector<8x128xf32>
    %cst_49 = arith.constant 5.000000e-01 : f32
    %144 = vector.broadcast %cst_49 : f32 to vector<8x128xf32>
    %145 = arith.addf %143, %144 : vector<8x128xf32>
    %146 = vector.extract_strided_slice %135 {offsets = [0, 256], sizes = [8, 128], strides = [1, 1]} : vector<8x512xf32> to vector<8x128xf32>
    %147 = vector.extract_strided_slice %135 {offsets = [0, 384], sizes = [8, 128], strides = [1, 1]} : vector<8x512xf32> to vector<8x128xf32>
    %cst_50 = arith.constant 5.000000e-01 : f32
    %148 = vector.broadcast %cst_50 : f32 to vector<8x128xf32>
    %149 = arith.mulf %148, %147 : vector<8x128xf32>
    %cst_51 = arith.constant 5.000000e-01 : f32
    %150 = vector.broadcast %cst_51 : f32 to vector<8x128xf32>
    %151 = arith.addf %149, %150 : vector<8x128xf32>
    %152 = arith.mulf %145, %125 : vector<8x128xf32>
    %153 = arith.mulf %140, %146 : vector<8x128xf32>
    %154 = arith.addf %152, %153 : vector<8x128xf32>
    %155 = math.tanh %154 : vector<8x128xf32>
    %156 = arith.mulf %151, %155 : vector<8x128xf32>
    %c40_i32 = arith.constant 40 : i32
    %157 = tpu.assume_multiple %c40_i32, 8 : i32
    %158 = arith.index_cast %157 : i32 to index
    %c0_52 = arith.constant 0 : index
    %159 = vector.load %arg8[%158, %c0_52] : memref<64x512xbf16, #tpu.memory_space<vmem>>, vector<8x512xbf16>
    %160 = arith.extf %159 : vector<8x512xbf16> to vector<8x512xf32>
    %161 = arith.truncf %156 : vector<8x128xf32> to vector<8x128xbf16>
    %cst_53 = arith.constant dense<0.000000e+00> : vector<8x512xf32>
    %162 = tpu.matmul %161, %9, %cst_53 {dimension_numbers = #tpu.dot_dimension_numbers<[1], [0], [0], [1], [0, 0, 1, 1], [], []>} : vector<8x128xbf16>, vector<128x512xbf16>, vector<8x512xf32> -> vector<8x512xf32>
    %163 = arith.addf %160, %162 : vector<8x512xf32>
    %164 = math.tanh %163 : vector<8x512xf32>
    %165 = vector.extract_strided_slice %164 {offsets = [0, 0], sizes = [8, 128], strides = [1, 1]} : vector<8x512xf32> to vector<8x128xf32>
    %cst_54 = arith.constant 5.000000e-01 : f32
    %166 = vector.broadcast %cst_54 : f32 to vector<8x128xf32>
    %167 = arith.mulf %166, %165 : vector<8x128xf32>
    %cst_55 = arith.constant 5.000000e-01 : f32
    %168 = vector.broadcast %cst_55 : f32 to vector<8x128xf32>
    %169 = arith.addf %167, %168 : vector<8x128xf32>
    %170 = vector.extract_strided_slice %164 {offsets = [0, 128], sizes = [8, 128], strides = [1, 1]} : vector<8x512xf32> to vector<8x128xf32>
    %cst_56 = arith.constant 5.000000e-01 : f32
    %171 = vector.broadcast %cst_56 : f32 to vector<8x128xf32>
    %172 = arith.mulf %171, %170 : vector<8x128xf32>
    %cst_57 = arith.constant 5.000000e-01 : f32
    %173 = vector.broadcast %cst_57 : f32 to vector<8x128xf32>
    %174 = arith.addf %172, %173 : vector<8x128xf32>
    %175 = vector.extract_strided_slice %164 {offsets = [0, 256], sizes = [8, 128], strides = [1, 1]} : vector<8x512xf32> to vector<8x128xf32>
    %176 = vector.extract_strided_slice %164 {offsets = [0, 384], sizes = [8, 128], strides = [1, 1]} : vector<8x512xf32> to vector<8x128xf32>
    %cst_58 = arith.constant 5.000000e-01 : f32
    %177 = vector.broadcast %cst_58 : f32 to vector<8x128xf32>
    %178 = arith.mulf %177, %176 : vector<8x128xf32>
    %cst_59 = arith.constant 5.000000e-01 : f32
    %179 = vector.broadcast %cst_59 : f32 to vector<8x128xf32>
    %180 = arith.addf %178, %179 : vector<8x128xf32>
    %181 = arith.mulf %174, %154 : vector<8x128xf32>
    %182 = arith.mulf %169, %175 : vector<8x128xf32>
    %183 = arith.addf %181, %182 : vector<8x128xf32>
    %184 = math.tanh %183 : vector<8x128xf32>
    %185 = arith.mulf %180, %184 : vector<8x128xf32>
    %c48_i32 = arith.constant 48 : i32
    %186 = tpu.assume_multiple %c48_i32, 8 : i32
    %187 = arith.index_cast %186 : i32 to index
    %c0_60 = arith.constant 0 : index
    %188 = vector.load %arg8[%187, %c0_60] : memref<64x512xbf16, #tpu.memory_space<vmem>>, vector<8x512xbf16>
    %189 = arith.extf %188 : vector<8x512xbf16> to vector<8x512xf32>
    %190 = arith.truncf %185 : vector<8x128xf32> to vector<8x128xbf16>
    %cst_61 = arith.constant dense<0.000000e+00> : vector<8x512xf32>
    %191 = tpu.matmul %190, %9, %cst_61 {dimension_numbers = #tpu.dot_dimension_numbers<[1], [0], [0], [1], [0, 0, 1, 1], [], []>} : vector<8x128xbf16>, vector<128x512xbf16>, vector<8x512xf32> -> vector<8x512xf32>
    %192 = arith.addf %189, %191 : vector<8x512xf32>
    %193 = math.tanh %192 : vector<8x512xf32>
    %194 = vector.extract_strided_slice %193 {offsets = [0, 0], sizes = [8, 128], strides = [1, 1]} : vector<8x512xf32> to vector<8x128xf32>
    %cst_62 = arith.constant 5.000000e-01 : f32
    %195 = vector.broadcast %cst_62 : f32 to vector<8x128xf32>
    %196 = arith.mulf %195, %194 : vector<8x128xf32>
    %cst_63 = arith.constant 5.000000e-01 : f32
    %197 = vector.broadcast %cst_63 : f32 to vector<8x128xf32>
    %198 = arith.addf %196, %197 : vector<8x128xf32>
    %199 = vector.extract_strided_slice %193 {offsets = [0, 128], sizes = [8, 128], strides = [1, 1]} : vector<8x512xf32> to vector<8x128xf32>
    %cst_64 = arith.constant 5.000000e-01 : f32
    %200 = vector.broadcast %cst_64 : f32 to vector<8x128xf32>
    %201 = arith.mulf %200, %199 : vector<8x128xf32>
    %cst_65 = arith.constant 5.000000e-01 : f32
    %202 = vector.broadcast %cst_65 : f32 to vector<8x128xf32>
    %203 = arith.addf %201, %202 : vector<8x128xf32>
    %204 = vector.extract_strided_slice %193 {offsets = [0, 256], sizes = [8, 128], strides = [1, 1]} : vector<8x512xf32> to vector<8x128xf32>
    %205 = vector.extract_strided_slice %193 {offsets = [0, 384], sizes = [8, 128], strides = [1, 1]} : vector<8x512xf32> to vector<8x128xf32>
    %cst_66 = arith.constant 5.000000e-01 : f32
    %206 = vector.broadcast %cst_66 : f32 to vector<8x128xf32>
    %207 = arith.mulf %206, %205 : vector<8x128xf32>
    %cst_67 = arith.constant 5.000000e-01 : f32
    %208 = vector.broadcast %cst_67 : f32 to vector<8x128xf32>
    %209 = arith.addf %207, %208 : vector<8x128xf32>
    %210 = arith.mulf %203, %183 : vector<8x128xf32>
    %211 = arith.mulf %198, %204 : vector<8x128xf32>
    %212 = arith.addf %210, %211 : vector<8x128xf32>
    %213 = math.tanh %212 : vector<8x128xf32>
    %214 = arith.mulf %209, %213 : vector<8x128xf32>
    %c56_i32 = arith.constant 56 : i32
    %215 = tpu.assume_multiple %c56_i32, 8 : i32
    %216 = arith.index_cast %215 : i32 to index
    %c0_68 = arith.constant 0 : index
    %217 = vector.load %arg8[%216, %c0_68] : memref<64x512xbf16, #tpu.memory_space<vmem>>, vector<8x512xbf16>
    %218 = arith.extf %217 : vector<8x512xbf16> to vector<8x512xf32>
    %219 = arith.truncf %214 : vector<8x128xf32> to vector<8x128xbf16>
    %cst_69 = arith.constant dense<0.000000e+00> : vector<8x512xf32>
    %220 = tpu.matmul %219, %9, %cst_69 {dimension_numbers = #tpu.dot_dimension_numbers<[1], [0], [0], [1], [0, 0, 1, 1], [], []>} : vector<8x128xbf16>, vector<128x512xbf16>, vector<8x512xf32> -> vector<8x512xf32>
    %221 = arith.addf %218, %220 : vector<8x512xf32>
    %222 = math.tanh %221 : vector<8x512xf32>
    %223 = vector.extract_strided_slice %222 {offsets = [0, 0], sizes = [8, 128], strides = [1, 1]} : vector<8x512xf32> to vector<8x128xf32>
    %cst_70 = arith.constant 5.000000e-01 : f32
    %224 = vector.broadcast %cst_70 : f32 to vector<8x128xf32>
    %225 = arith.mulf %224, %223 : vector<8x128xf32>
    %cst_71 = arith.constant 5.000000e-01 : f32
    %226 = vector.broadcast %cst_71 : f32 to vector<8x128xf32>
    %227 = arith.addf %225, %226 : vector<8x128xf32>
    %228 = vector.extract_strided_slice %222 {offsets = [0, 128], sizes = [8, 128], strides = [1, 1]} : vector<8x512xf32> to vector<8x128xf32>
    %cst_72 = arith.constant 5.000000e-01 : f32
    %229 = vector.broadcast %cst_72 : f32 to vector<8x128xf32>
    %230 = arith.mulf %229, %228 : vector<8x128xf32>
    %cst_73 = arith.constant 5.000000e-01 : f32
    %231 = vector.broadcast %cst_73 : f32 to vector<8x128xf32>
    %232 = arith.addf %230, %231 : vector<8x128xf32>
    %233 = vector.extract_strided_slice %222 {offsets = [0, 256], sizes = [8, 128], strides = [1, 1]} : vector<8x512xf32> to vector<8x128xf32>
    %234 = vector.extract_strided_slice %222 {offsets = [0, 384], sizes = [8, 128], strides = [1, 1]} : vector<8x512xf32> to vector<8x128xf32>
    %cst_74 = arith.constant 5.000000e-01 : f32
    %235 = vector.broadcast %cst_74 : f32 to vector<8x128xf32>
    %236 = arith.mulf %235, %234 : vector<8x128xf32>
    %cst_75 = arith.constant 5.000000e-01 : f32
    %237 = vector.broadcast %cst_75 : f32 to vector<8x128xf32>
    %238 = arith.addf %236, %237 : vector<8x128xf32>
    %239 = arith.mulf %232, %212 : vector<8x128xf32>
    %240 = arith.mulf %227, %233 : vector<8x128xf32>
    %241 = arith.addf %239, %240 : vector<8x128xf32>
    %242 = math.tanh %241 : vector<8x128xf32>
    %243 = arith.mulf %238, %242 : vector<8x128xf32>
    %244 = arith.truncf %243 : vector<8x128xf32> to vector<8x128xbf16>
    %c0_76 = arith.constant 0 : index
    %c0_77 = arith.constant 0 : index
    %245 = vector.load %arg5[%c0_76, %c0_77] : memref<128x128xbf16, #tpu.memory_space<vmem>>, vector<128x128xbf16>
    %cst_78 = arith.constant dense<0.000000e+00> : vector<8x128xf32>
    %246 = tpu.matmul %244, %245, %cst_78 {dimension_numbers = #tpu.dot_dimension_numbers<[1], [0], [0], [1], [0, 0, 1, 1], [], []>} : vector<8x128xbf16>, vector<128x128xbf16>, vector<8x128xf32> -> vector<8x128xf32>
    %c0_79 = arith.constant 0 : index
    %c0_80 = arith.constant 0 : index
    %247 = vector.load %arg6[%c0_79, %c0_80] : memref<1x128xf32, #tpu.memory_space<vmem>>, vector<1x128xf32>
    %248 = vector.broadcast %247 : vector<1x128xf32> to vector<8x128xf32>
    %249 = arith.addf %246, %248 : vector<8x128xf32>
    %c0_81 = arith.constant 0 : index
    %c0_82 = arith.constant 0 : index
    %250 = vector.load %arg7[%c0_81, %c0_82] : memref<8x128xf32, #tpu.memory_space<vmem>>, vector<8x128xf32>
    tpu.vector_store %arg7[%c0_81, %c0_82], %249 {strides = array<i32>} : memref<8x128xf32, #tpu.memory_space<vmem>>, vector<8x128xf32>,
    return
  }
  func.func @transform_0(%arg0: i32) -> (i32, i32, i32) {
    %c0_i32 = arith.constant 0 : i32
    %c0_i32_0 = arith.constant 0 : i32
    %c0_i32_1 = arith.constant 0 : i32
    return %c0_i32, %arg0, %c0_i32_0 : i32, i32, i32
  }
  func.func @transform_1(%arg0: i32) -> (i32, i32) {
    %c0_i32 = arith.constant 0 : i32
    %c0_i32_0 = arith.constant 0 : i32
    %c0_i32_1 = arith.constant 0 : i32
    return %c0_i32, %c0_i32_0 : i32, i32
  }
  func.func @transform_2(%arg0: i32) -> (i32, i32) {
    %c0_i32 = arith.constant 0 : i32
    %c0_i32_0 = arith.constant 0 : i32
    %c0_i32_1 = arith.constant 0 : i32
    return %c0_i32, %c0_i32_0 : i32, i32
  }
  func.func @transform_3(%arg0: i32) -> (i32, i32) {
    %c0_i32 = arith.constant 0 : i32
    %c0_i32_0 = arith.constant 0 : i32
    %c0_i32_1 = arith.constant 0 : i32
    return %c0_i32, %c0_i32_0 : i32, i32
  }
  func.func @transform_4(%arg0: i32) -> (i32, i32) {
    %c0_i32 = arith.constant 0 : i32
    %c0_i32_0 = arith.constant 0 : i32
    %c0_i32_1 = arith.constant 0 : i32
    return %c0_i32, %c0_i32_0 : i32, i32
  }
  func.func @transform_5(%arg0: i32) -> (i32, i32) {
    %c0_i32 = arith.constant 0 : i32
    %c0_i32_0 = arith.constant 0 : i32
    %c0_i32_1 = arith.constant 0 : i32
    return %c0_i32, %c0_i32_0 : i32, i32
  }
  func.func @transform_6(%arg0: i32) -> (i32, i32) {
    %c0_i32 = arith.constant 0 : i32
    %c0_i32_0 = arith.constant 0 : i32
    return %arg0, %c0_i32 : i32, i32
  }
}

</mosaic_0001>

<bundles_post_ra>
// kernel: tpu_custom_call.1
= control target key start
LH: loop header
LB: loop body
LE: loop exit
PB: predicated region body
PF: predicated region fallthrough
CT: control target
= control target key end

     0   :  { %11 = vsyncpa [#allocation5], 0  ;;  %s2799_s0 = inlined_call_operand.vmem [shape: bf16[8,16,13], index: 0, kind: input, shape index: {}]   ;;  %s2800_s1 = inlined_call_operand.vmem [shape: bf16[13,512], index: 1, kind: input, shape index: {}]   ;;  %s2801_s2 = inlined_call_operand.hbm [shape: bf16[128,512], index: 2, kind: input, shape index: {}]   ;;  %s2802_s3 = inlined_call_operand.vmem [shape: f32[1,512], index: 3, kind: input, shape index: {}]   ;;  %s2803_s4 = inlined_call_operand.vmem [shape: bf16[128,128], index: 4, kind: input, shape index: {}]   ;;  %s2804_s5 = inlined_call_operand.vmem [shape: f32[1,128], index: 5, kind: input, shape index: {}]   ;;  %s2805_s6 = inlined_call_operand.hbm [shape: f32[16,128], index: 6, kind: output, shape index: {}]  }
   0x1   :  { %12 = vsyncpa [#allocation6], 0 }
   0x2   :  { %14 = vsyncpa [#allocation6 + $0x1], 0  ;;  %s2140_s21 = smov 0   ;;  %s2142_s22 = smov 0  }
   0x3   :  { %s2144_s23 = smov 0   ;;  %s2146_s24 = smov 0  }
   0x4 LB: > { %s2161_s25 = sadd.s32 4294967295, %s2098_s24   ;;  %s1596_s26 = sadd.s32 4294967294, %s2098_s24   ;;  %s2098_s24 = sphi %s2146_s24, %s2828_s24   ;;  %s2094_s23 = sphi %s2144_s23, %s2827_s23   ;;  %s2090_s22 = sphi %s2142_s22, %s2826_s22   ;;  %s2086_s21 = sphi %s2140_s21, %s2825_s21  }
   0x5   : > { %s2165_s27 = sadd.s32 1, %s2098_s24   ;;  %s27_s28 = sadd.s32 1, %s2094_s23 }
   0x6   : > { %s24_s29 = ssub.s32 %s2098_s24, %s2165_s27  ;;  %p34_p0 = scmp.ne.s32.totalorder %s2094_s23, %s2090_s22 }
   0x7   : > { %p25_p1 = scmp.eq.s32.totalorder %s24_s29, 0  ;;  %p35_p2 = scmp.eq.s32.totalorder %s2098_s24, 0 }
   0x8   : > { %p169_p3 = scmp.eq.s32.totalorder %s2161_s25, 1  ;;  %p174_p4 = scmp.ne.s32.totalorder %s2090_s22, %s2086_s21 }
   0x9   : > { %s2177_s30 = scalar_select %p25_p1, %s2094_s23, %s27_s28  }
   0xa   : > { %p2179_p5 = por %p35_p2, %p34_p0  ;;  %p2183_p6 = por %p169_p3, %p34_p0 }
   0xb   : > { %p175_p7 = scmp.eq.s32.totalorder %s1596_s26, 1  ;;  %p1597_p8 = scmp.ge.s32.totalorder %s2098_s24, 1 }
   0xc   : > { %p182_p9 = scmp.lt.s32.totalorder %s2098_s24, 3  ;;  %p1881_p11 = scmp.eq.s32.totalorder %s2161_s25, 0 }
   0xd   : > { %p2189_p10 = por %p175_p7, %p174_p4  ;;  %s196_s13 = sshll.u32 %s2801_s2, 4  ;;  %s197_s13 = int_to_ptr.hbm [resolvable:$true] %s196_s13 }
   0xe   : > { %p2194_p12 = pnand %p1597_p8, %p182_p9  ;;  %s2100_s14 = smov [#allocation4]  }
   0xf   : > { %s198_s15 = sshll.u32 %s2100_s14, 4  ;;  %s2101_s16 = smov 256   ;;  %s199_s15 = int_to_ptr.vmem [resolvable:$true] %s198_s15 }
  0x10   : > { %p1873_p13 = pneg %p2194_p12  ;;  %s2102_s17 = smov 16  }
  0x11   : > { %p1599_p1 = scmp.ge.s32.totalorder %s2098_s24, 2 }
  0x12   : > { %p1874_p0 = pnand %p1881_p11, %p1873_p13 }
  0x13   : > { %217 = sbr.rel (%p1599_p1) target bundleno = 36 (0x24), region = 36 }
  0x14   : > { %1876 = dma.hbm_to_vmem [thread:$0]  (!%p1874_p0), %s197_s13, 4096, %s199_s15, [#allocation5], %s2101_s16, %s2101_s16, %s2102_s17  }
  0x18   : > { %220 = sbr.rel (!%p2179_p5) target bundleno = 36 (0x24), region = 40  ;;  %s222_s18 = sand.u32 (%p2179_p5), 1, %s2094_s23  }
  0x19   : > { %s1601_s19 = sshll.u32 (%p2179_p5), %s2098_s24, 2  ;;  %s1600_s20 = sshll.u32 (%p2179_p5), %s222_s18, 5 }
  0x1a   : > { %s226_s29 = scalar_lea.vmem (%p2179_p5), %s2799_s0, %s1601_s19  ;;  %s224_s11 = scalar_lea.vmem (%p2179_p5), [#allocation3], %s1600_s20 }
  0x1b   : > { %v243_v0 = vld [vmem:[%s226_s29] sm:$0xf] (%p2179_p5)  ;;  %v245_v1 = vld [vmem:[%s226_s29 + $0x8] sm:$0xf] (%p2179_p5)  ;;  %v247_v2 = vld [vmem:[%s226_s29 + $0x10] sm:$0xf] (%p2179_p5) }
  0x1c   : > { %244 = vst [vmem:[%s224_s11] sm:$0xf] (%p2179_p5), %v243_v0  ;;  %v249_v3 = vld [vmem:[%s226_s29 + $0x18] sm:$0xf] (%p2179_p5)  ;;  %v251_v4 = vld [vmem:[%s226_s29 + $0x20] sm:$0xf] (%p2179_p5) }
  0x1d   : > { %246 = vst [vmem:[%s224_s11 + $0x4] sm:$0xf] %v245_v1  ;;  %v253_v5 = vld [vmem:[%s226_s29 + $0x28] sm:$0xf]  ;;  %v255_v6 = vld [vmem:[%s226_s29 + $0x30] sm:$0xf] }
  0x1e   : > { %248 = vst [vmem:[%s224_s11 + $0x8] sm:$0xf] %v247_v2  ;;  %v257_v7 = vld [vmem:[%s226_s29 + $0x38] sm:$0xf] }
  0x1f   : > { %250 = vst [vmem:[%s224_s11 + $0xc] sm:$0xf] %v249_v3 }
  0x20   : > { %252 = vst [vmem:[%s224_s11 + $0x10] sm:$0xf] %v251_v4 }
  0x21   : > { %254 = vst [vmem:[%s224_s11 + $0x14] sm:$0xf] %v253_v5 }
  0x22   : > { %256 = vst [vmem:[%s224_s11 + $0x18] sm:$0xf] %v255_v6 }
  0x23   : > { %258 = vst [vmem:[%s224_s11 + $0x1c] sm:$0xf] %v257_v7 }
  0x24 PF: > { %301 = sbr.rel (%p2194_p12) target bundleno = 1522 (0x5f2), region = 81 }
  0x29   : > { %s2218_s7 = sand.u32 1, %s2090_s22  }
  0x2a   : > { %s1603_s12 = sshll.u32 %s2218_s7, 5 }
  0x2b   : > { %s2221_s13 = scalar_lea.vmem [#allocation3], %s1603_s12 }
  0x2c   : > { %2077 = dma.done.wait (%p1881_p11), [#allocation5], 4096  }
  0x2d   : > { %2079 = vsyncadd (%p1881_p11), [#allocation5], 4294963200  ;;  %vm410_vm0 = vcmask 1045504   ;;  %vm411_vm1 = vcmask 1046528   ;;  %v2103_v8 = vmov 65535   ;;  %v2246_v20 = vld [vmem:[%s2221_s13] sm:$0xff] }
  0x2e   : > { %v412_v9 = vsel %vm410_vm0, 4294967295, %v2103_v8  ;;  %v1624_v11 = vld [vmem:[%s2800_s1] sm:$0xf]  ;;  %v1824_v12 = vld [vmem:[%s2800_s1 + $0xc] sm:$0x70]  ;;  %v2255_v28 = vld [vmem:[%s2221_s13 + $0x18] sm:$0xff] }
  0x2f   : > { %v413_v10 = vsel %vm411_vm1, %v412_v9, 0  ;;  %v1632_v13 = vld [vmem:[%s2800_s1 + $0x8] sm:$0xf]  ;;  %v1625_v14 = vor.u32 %v1824_v12, %v1624_v11  ;;  %v1825_v15 = vld [vmem:[%s2800_s1 + $0x14] sm:$0x70]  ;;  %vm397_vm2 = vcmask 105472  }
  0x30   : > { %v1823_v16 = vld [vmem:[%s2800_s1 + $0xc] sm:$0xf]  ;;  %v1634_v17 = vld [vmem:[%s2800_s1 + $0x18] sm:$0x70]  ;;  %v1633_v18 = vor.u32 %v1825_v15, %v1632_v13  ;;  %v1822_v21 = vld [vmem:[%s2800_s1 + $0x4] sm:$0xf] }
  0x31   : > { %v1637_v19 = vor.u32 %v1823_v16, %v1634_v17  ;;  %v415_v22 = vand.u32 %v1625_v14, %v413_v10  ;;  %v1626_v23 = vld [vmem:[%s2800_s1 + $0x10] sm:$0x70]  ;;  %v1776_v24 = vld [vmem:[#allocation4 + $0xe8] sm:$0xf]  ;;  %v1857_v25 = vld [vmem:[#allocation4 + $0xf4] sm:$0xf0] }
  0x32   : > { %v421_v26 = vand.u32 %v1633_v18, %v413_v10  ;;  %v1629_v29 = vor.u32 %v1822_v21, %v1626_v23  ;;  %v2257_v30 = vor.u32 %v1857_v25, %v1776_v24  ;;  %v1854_v31 = vld [vmem:[#allocation4 + $0xe4] sm:$0xf]  ;;  %v1770_v32 = vld [vmem:[#allocation4 + $0xf0] sm:$0xf0]  ;;  %v1768_v33 = vld [vmem:[#allocation4 + $0xe0] sm:$0xf] }
  0x33   : > { %v424_v27 = vand.u32 %v1637_v19, %v413_v10  ;;  %433 = vmatpush.bf16.msra.mxu0 %v415_v22  ;;  %1866 = vmatpush.bf16.msra.mxu1 %v415_v22  ;;  %v1856_v34 = vld [vmem:[#allocation4 + $0xec] sm:$0xf0]  ;;  %v2259_v36 = vor.u32 %v1854_v31, %v1770_v32  ;;  %v1855_v37 = vld [vmem:[#allocation4 + $0xec] sm:$0xf]  ;;  %v1778_v38 = vld [vmem:[#allocation4 + $0xf8] sm:$0xf0] }
  0x34   : > { %491 = vmatpush.bf16.msra.mxu2 %v421_v26  ;;  %v418_v35 = vand.u32 %v1629_v29, %v413_v10  ;;  %v2262_v39 = vor.u32 %v1856_v34, %v1768_v33  ;;  %v2264_v40 = vor.u32 %v1855_v37, %v1778_v38  ;;  %v1760_v41 = vld [vmem:[#allocation4 + $0xc8] sm:$0xf]  ;;  %v1853_v42 = vld [vmem:[#allocation4 + $0xd4] sm:$0xf0]  ;;  %v1850_v43 = vld [vmem:[#allocation4 + $0xc4] sm:$0xf] }
  0x35   : > { %520 = vmatpush.bf16.msra.mxu3 %v424_v27  ;;  %v1752_v44 = vld [vmem:[#allocation4 + $0xc0] sm:$0xf]  ;;  %v1852_v45 = vld [vmem:[#allocation4 + $0xcc] sm:$0xf0]  ;;  %v2270_v46 = vor.u32 %v1853_v42, %v1760_v41  ;;  %v1754_v47 = vld [vmem:[#allocation4 + $0xd0] sm:$0xf0] }
  0x36   : > { %1638 = vmatmul.msk.bf16.vlgmr.msra.gmra.mxu0 %vm397_vm2, %v2246_v20  ;;  %1641 = vmatmul.msk.bf16.vlgmr.msra.gmra.mxu1 %vm397_vm2, %v2255_v28  ;;  %v1851_v48 = vld [vmem:[#allocation4 + $0xcc] sm:$0xf]  ;;  %v2277_v49 = vor.u32 %v1850_v43, %v1754_v47  ;;  %v1762_v50 = vld [vmem:[#allocation4 + $0xd8] sm:$0xf0]  ;;  %v1744_v51 = vld [vmem:[#allocation4 + $0xa8] sm:$0xf]  ;;  %v2280_v53 = vor.u32 %v1852_v45, %v1752_v44 }
  0x37   : > { %462 = vmatpush.bf16.msrb.mxu1 %v418_v35  ;;  %1646 = vmatmul.msk.bf16.vlgmr.msra.gmra.mxu2 %vm397_vm2, %v2246_v20  ;;  %v1849_v52 = vld [vmem:[#allocation4 + $0xb4] sm:$0xf0]  ;;  %v2283_v54 = vor.u32 %v1851_v48, %v1762_v50  ;;  %v1846_v55 = vld [vmem:[#allocation4 + $0xa4] sm:$0xf]  ;;  %v1738_v56 = vld [vmem:[#allocation4 + $0xb0] sm:$0xf0] }
  0x38   : > { %801 = vmatpush.bf16.msrb.mxu2 %v2257_v30  ;;  %1650 = vmatmul.msk.bf16.vlgmr.msra.gmra.mxu3 %vm397_vm2, %v2246_v20  ;;  %v1736_v57 = vld [vmem:[#allocation4 + $0xa0] sm:$0xf]  ;;  %v1848_v58 = vld [vmem:[#allocation4 + $0xac] sm:$0xf0]  ;;  %v2286_v59 = vor.u32 %v1849_v52, %v1744_v51  ;;  %v1847_v60 = vld [vmem:[#allocation4 + $0xac] sm:$0xf]  ;;  %v2289_v62 = vor.u32 %v1846_v55, %v1738_v56 }
  0x39   : > { %775 = vmatpush.bf16.msrb.mxu0 %v2262_v39  ;;  %814 = vmatpush.bf16.msrb.mxu3 %v2264_v40  ;;  %v1746_v61 = vld [vmem:[#allocation4 + $0xb8] sm:$0xf0]  ;;  %v1728_v63 = vld [vmem:[#allocation4 + $0x88] sm:$0xf]  ;;  %v1845_v0 = vld [vmem:[#allocation4 + $0x94] sm:$0xf0]  ;;  %v2292_v1 = vor.u32 %v1848_v58, %v1736_v57 }
  0x3a   : > { %v2295_v2 = vor.u32 %v1847_v60, %v1746_v61  ;;  %v1842_v3 = vld [vmem:[#allocation4 + $0x84] sm:$0xf]  ;;  %v1722_v4 = vld [vmem:[#allocation4 + $0x90] sm:$0xf0]  ;;  %v1720_v5 = vld [vmem:[#allocation4 + $0x80] sm:$0xf]  ;;  %v2298_v7 = vor.u32 %v1845_v0, %v1728_v63 }
  0x3b   : > { %788 = vmatpush.bf16.msra.mxu1 %v2259_v36  ;;  %v1844_v6 = vld [vmem:[#allocation4 + $0x8c] sm:$0xf0]  ;;  %v1843_v8 = vld [vmem:[#allocation4 + $0x8c] sm:$0xf]  ;;  %v1730_v9 = vld [vmem:[#allocation4 + $0x98] sm:$0xf0]  ;;  %v2301_v10 = vor.u32 %v1842_v3, %v1722_v4 }
  0x3c   : > { %802 = vmatpush.bf16.msrb.mxu2 %v2270_v46  ;;  %v2304_v11 = vor.u32 %v1844_v6, %v1720_v5  ;;  %v2307_v12 = vor.u32 %v1843_v8, %v1730_v9  ;;  %v1712_v13 = vld [vmem:[#allocation4 + $0x68] sm:$0xf]  ;;  %v1841_v14 = vld [vmem:[#allocation4 + $0x74] sm:$0xf0]  ;;  %v1704_v16 = vld [vmem:[#allocation4 + $0x60] sm:$0xf] }
  0x3d   : > { %776 = vmatpush.bf16.msrb.mxu0 %v2280_v53  ;;  %815 = vmatpush.bf16.msrb.mxu3 %v2283_v54  ;;  %v2310_v15 = vld [vmem:[%s2221_s13 + $0x8] sm:$0xff]  ;;  %v1840_v17 = vld [vmem:[#allocation4 + $0x6c] sm:$0xf0]  ;;  %v2314_v18 = vor.u32 %v1841_v14, %v1712_v13  ;;  %v1688_v21 = vld [vmem:[#allocation4 + $0x40] sm:$0xf]  ;;  %s1815_s19 = sshll.u32 %s2161_s25, 3 }
  0x3e   : > { %v2317_v19 = vor.u32 %v1840_v17, %v1704_v16  ;;  %v1836_v22 = vld [vmem:[#allocation4 + $0x4c] sm:$0xf0]  ;;  %v1839_v23 = vld [vmem:[#allocation4 + $0x6c] sm:$0xf]  ;;  %v1714_v24 = vld [vmem:[#allocation4 + $0x78] sm:$0xf0]  ;;  %s1507_s29 = scalar_lea.hbm %s2805_s6, %s1815_s19 }
  0x3f   : > { %789 = vmatpush.bf16.msra.mxu1 %v2277_v49  ;;  %v2326_v25 = vor.u32 %v1839_v23, %v1714_v24  ;;  %v1672_v26 = vld [vmem:[#allocation4 + $0x20] sm:$0xf]  ;;  %v1832_v27 = vld [vmem:[#allocation4 + $0x2c] sm:$0xf0]  ;;  %v1838_v29 = vld [vmem:[#allocation4 + $0x64] sm:$0xf] }
  0x40   : > { %803 = vmatpush.bf16.msrb.mxu2 %v2286_v59  ;;  %v1706_v31 = vld [vmem:[#allocation4 + $0x70] sm:$0xf0]  ;;  %v1696_v32 = vld [vmem:[#allocation4 + $0x48] sm:$0xf]  ;;  %v1837_v34 = vld [vmem:[#allocation4 + $0x54] sm:$0xf0]  ;;  %v2348_v52 = vor.u32 %v1832_v27, %v1672_v26 }
  0x41   : > { %777 = vmatpush.bf16.msrb.mxu0 %v2292_v1  ;;  %816 = vmatpush.bf16.msrb.mxu3 %v2295_v2  ;;  %v2334_v33 = vor.u32 %v1838_v29, %v1706_v31  ;;  %v1835_v35 = vld [vmem:[#allocation4 + $0x4c] sm:$0xf]  ;;  %v1698_v37 = vld [vmem:[#allocation4 + $0x58] sm:$0xf0]  ;;  %v2337_v38 = vor.u32 %v1837_v34, %v1696_v32  ;;  %v1834_v42 = vld [vmem:[#allocation4 + $0x44] sm:$0xf] }
  0x42   : > { %v2339_v41 = vor.u32 %v1835_v35, %v1698_v37  ;;  %v1690_v43 = vld [vmem:[#allocation4 + $0x50] sm:$0xf0]  ;;  %v1680_v44 = vld [vmem:[#allocation4 + $0x28] sm:$0xf]  ;;  %v1833_v47 = vld [vmem:[#allocation4 + $0x34] sm:$0xf0] }
  0x43   : > { %790 = vmatpush.bf16.msra.mxu1 %v2289_v62  ;;  %v2342_v45 = vor.u32 %v1834_v42, %v1690_v43  ;;  %v1831_v48 = vld [vmem:[#allocation4 + $0x2c] sm:$0xf]  ;;  %v1682_v50 = vld [vmem:[#allocation4 + $0x38] sm:$0xf0]  ;;  %v2345_v51 = vor.u32 %v1833_v47, %v1680_v44  ;;  %v1656_v55 = vld [vmem:[#allocation4] sm:$0xf] }
  0x44   : > { %804 = vmatpush.bf16.msrb.mxu2 %v2298_v7  ;;  %v2351_v56 = vor.u32 %v1831_v48, %v1682_v50  ;;  %v1664_v57 = vld [vmem:[#allocation4 + $0x8] sm:$0xf]  ;;  %v1829_v58 = vld [vmem:[#allocation4 + $0x14] sm:$0xf0]  ;;  %v1828_v60 = vld [vmem:[#allocation4 + $0xc] sm:$0xf0] }
  0x45   : > { %778 = vmatpush.bf16.msrb.mxu0 %v2304_v11  ;;  %817 = vmatpush.bf16.msrb.mxu3 %v2307_v12  ;;  %v1827_v61 = vld [vmem:[#allocation4 + $0xc] sm:$0xf]  ;;  %v1666_v63 = vld [vmem:[#allocation4 + $0x18] sm:$0xf0]  ;;  %v2355_v0 = vor.u32 %v1829_v58, %v1664_v57  ;;  %v2358_v3 = vor.u32 %v1828_v60, %v1656_v55  ;;  %v1820_v5 = vld [vmem:[%s2221_s13 + $0x10] sm:$0xff]  ;;  %s1605_s20 = sshll.u32 %s2218_s7, 3 }
  0x46   : > { %1639 = vmatmul.msk.bf16.gmra.mxu0 %vm397_vm2, %v2310_v15  ;;  %1642 = vmatmul.msk.bf16.vlgmr.msrb.gmra.mxu1 %vm397_vm2, %v2246_v20  ;;  %v2332_v20 = vor.u32 %v1836_v22, %v1688_v21  ;;  %v2361_v4 = vor.u32 %v1827_v61, %v1666_v63  ;;  %v1830_v6 = vld [vmem:[#allocation4 + $0x24] sm:$0xf]  ;;  %v1674_v8 = vld [vmem:[#allocation4 + $0x30] sm:$0xf0]  ;;  %s337_s10 = scalar_lea.vmem [#allocation7], %s1605_s20  ;;  %s1511_s15 = sshll.u32 %s1507_s29, 4  ;;  %s1512_s15 = int_to_ptr.hbm [resolvable:$true] %s1511_s15 }
  0x47   : > { %791 = vmatpush.bf16.msra.mxu1 %v2301_v10  ;;  %1647 = vmatmul.msk.bf16.gmra.mxu2 %vm397_vm2, %v2310_v15  ;;  %v2371_v9 = vor.u32 %v1830_v6, %v1674_v8  ;;  %v1826_v13 = vld [vmem:[#allocation4 + $0x4] sm:$0xf]  ;;  %v1658_v14 = vld [vmem:[#allocation4 + $0x10] sm:$0xf0]  ;;  %s1509_s14 = sshll.u32 %s337_s10, 4  ;;  %s1497_s13 = scalar_lea.sflag [#allocation6], %s2218_s7  ;;  %s1510_s14 = int_to_ptr.vmem [resolvable:$true] %s1509_s14 }
  0x48   : > { %1651 = vmatmul.msk.bf16.gmra.mxu3 %vm397_vm2, %v2310_v15  ;;  %805 = vmatpush.bf16.msrb.mxu2 %v2314_v18  ;;  %v2377_v16 = vor.u32 %v1826_v13, %v1658_v14  ;;  %s2046_s25 = sshra.s32 %s1512_s15, 4  ;;  %s2052_s19 = scalar_lea.hbm %s2805_s6, 16  ;;  %s2047_s25 = int_to_ptr.hbm [resolvable:$true] %s2046_s25 }
  0x49   : > { %779 = vmatpush.bf16.msrb.mxu0 %v2317_v19  ;;  %818 = vmatpush.bf16.msrb.mxu3 %v2326_v25  ;;  %s2048_s16 = scalar_lea.hbm %s2047_s25, 8  ;;  %p2053_p5 = scmp.lt.s32.totalorder %s2047_s25, %s2805_s6 }
  0x4a   : > { %p2049_p2 = scmp.ne.s32.totalorder %s2047_s25, %s2048_s16  ;;  %p2054_p7 = scmp.lt.s32.totalorder %s2052_s19, %s2048_s16 }
  0x4b   : > { %792 = vmatpush.bf16.msra.mxu1 %v2334_v33 }
  0x4c   : > { %806 = vmatpush.bf16.msrb.mxu2 %v2337_v38  ;;  %p2050_p3 = pnand %p2049_p2, %p2183_p6  ;;  %p2055_p8 = por %p2054_p7, %p2053_p5 }
  0x4d   : > { %780 = vmatpush.bf16.msrb.mxu0 %v2332_v20  ;;  %819 = vmatpush.bf16.msrb.mxu3 %v2339_v41 }
  0x4e   : > { %p2051_p4 = pneg %p2050_p3 }
  0x4f   : > { %793 = vmatpush.bf16.msra.mxu1 %v2342_v45 }
  0x50   : > { %807 = vmatpush.bf16.msrb.mxu2 %v2345_v51  ;;  %p2056_p9 = pnand %p2055_p8, %p2051_p4 }
  0x51   : > { %781 = vmatpush.bf16.msrb.mxu0 %v2348_v52  ;;  %820 = vmatpush.bf16.msrb.mxu3 %v2351_v56 }
  0x53   : > { %794 = vmatpush.bf16.msra.mxu1 %v2371_v9 }
  0x54   : > { %808 = vmatpush.bf16.msrb.mxu2 %v2355_v0 }
  0x55   : > { %782 = vmatpush.bf16.msrb.mxu0 %v2358_v3  ;;  %821 = vmatpush.bf16.msrb.mxu3 %v2361_v4 }
  0x56   : > { %1640 = vmatmul.msk.bf16.gmra.mxu0 %vm397_vm2, %v1820_v5  ;;  %1643 = vmatmul.msk.bf16.gmra.mxu1 %vm397_vm2, %v2310_v15  ;;  %v2104_v15 = vmov 0  }
  0x57   : > { %1648 = vmatmul.msk.bf16.gmra.mxu2 %vm397_vm2, %v1820_v5  ;;  %795 = vmatpush.bf16.msra.mxu1 %v2377_v16 }
  0x58   : > { %1652 = vmatmul.msk.bf16.gmra.mxu3 %vm397_vm2, %v1820_v5  ;;  %882 = vmatpush.bf16.msra.mxu2 %v2257_v30 }
  0x59   : > { %856 = vmatpush.bf16.msra.mxu0 %v2262_v39  ;;  %895 = vmatpush.bf16.msra.mxu3 %v2264_v40 }
  0x5b   : > { %869 = vmatpush.bf16.msrb.mxu1 %v2259_v36 }
  0x5c   : > { %883 = vmatpush.bf16.msra.mxu2 %v2270_v46 }
  0x5d   : > { %857 = vmatpush.bf16.msra.mxu0 %v2280_v53  ;;  %896 = vmatpush.bf16.msra.mxu3 %v2283_v54 }
  0x5f   : > { %870 = vmatpush.bf16.msrb.mxu1 %v2277_v49 }
  0x60   : > { %884 = vmatpush.bf16.msra.mxu2 %v2286_v59 }
  0x61   : > { %858 = vmatpush.bf16.msra.mxu0 %v2292_v1  ;;  %897 = vmatpush.bf16.msra.mxu3 %v2295_v2 }
  0x63   : > { %871 = vmatpush.bf16.msrb.mxu1 %v2289_v62 }
  0x64   : > { %885 = vmatpush.bf16.msra.mxu2 %v2298_v7 }
  0x65   : > { %859 = vmatpush.bf16.msra.mxu0 %v2304_v11  ;;  %898 = vmatpush.bf16.msra.mxu3 %v2307_v12 }
  0x66   : > { %1644 = vmatmul.msk.bf16.gmra.mxu1 %vm397_vm2, %v1820_v5  ;;  %783 = vmatmul.bf16.vlgmr.msrb.gmra.mxu0 %v2104_v15 }
  0x67   : > { %1649 = vmatmul.msk.bf16.gmra.mxu2 %vm397_vm2, %v2255_v28  ;;  %872 = vmatpush.bf16.msrb.mxu1 %v2301_v10 }
  0x68   : > { %1653 = vmatmul.msk.bf16.gmra.mxu3 %vm397_vm2, %v2255_v28  ;;  %886 = vmatpush.bf16.msra.mxu2 %v2314_v18 }
  0x69   : > { %860 = vmatpush.bf16.msra.mxu0 %v2317_v19  ;;  %899 = vmatpush.bf16.msra.mxu3 %v2326_v25 }
  0x6b   : > { %873 = vmatpush.bf16.msrb.mxu1 %v2334_v33 }
  0x6c   : > { %887 = vmatpush.bf16.msra.mxu2 %v2337_v38 }
  0x6d   : > { %861 = vmatpush.bf16.msra.mxu0 %v2332_v20  ;;  %900 = vmatpush.bf16.msra.mxu3 %v2339_v41 }
  0x6f   : > { %874 = vmatpush.bf16.msrb.mxu1 %v2342_v45 }
  0x70   : > { %888 = vmatpush.bf16.msra.mxu2 %v2345_v51 }
  0x71   : > { %862 = vmatpush.bf16.msra.mxu0 %v2348_v52  ;;  %901 = vmatpush.bf16.msra.mxu3 %v2351_v56 }
  0x73   : > { %875 = vmatpush.bf16.msrb.mxu1 %v2371_v9 }
  0x74   : > { %889 = vmatpush.bf16.msra.mxu2 %v2355_v0 }
  0x75   : > { %863 = vmatpush.bf16.msra.mxu0 %v2358_v3  ;;  %902 = vmatpush.bf16.msra.mxu3 %v2361_v4 }
  0x76   : > { %1645 = vmatmul.msk.bf16.gmra.mxu1 %vm397_vm2, %v2255_v28  ;;  %v351_v28 = vld [vmem:[%s2802_s3] sm:$0xf] }
  0x77   : > { %809 = vmatmul.bf16.vlgmr.msrb.gmra.mxu2 %v2104_v15  ;;  %876 = vmatpush.bf16.msrb.mxu1 %v2377_v16  ;;  %v2452_v17 = vperm.slane %v351_v28, 0  ;;  %v2457_v24 = vperm.slane %v351_v28, 2  ;;  %v2459_v26 = vperm.slane %v351_v28, 3  ;;  %v2473_v61 = vperm.slane %v351_v28, 1 }
  0x78   : > { %822 = vmatmul.bf16.vlgmr.msrb.gmra.mxu3 %v2104_v15  ;;  %963 = vmatpush.bf16.msrb.mxu2 %v2257_v30 }
  0x79   : > { %937 = vmatpush.bf16.msrb.mxu0 %v2262_v39  ;;  %976 = vmatpush.bf16.msrb.mxu3 %v2264_v40 }
  0x7c   : > { %964 = vmatpush.bf16.msrb.mxu2 %v2270_v46 }
  0x7d   : > { %938 = vmatpush.bf16.msrb.mxu0 %v2280_v53  ;;  %977 = vmatpush.bf16.msrb.mxu3 %v2283_v54 }
  0x80   : > { %965 = vmatpush.bf16.msrb.mxu2 %v2286_v59 }
  0x81   : > { %939 = vmatpush.bf16.msrb.mxu0 %v2292_v1  ;;  %978 = vmatpush.bf16.msrb.mxu3 %v2295_v2 }
  0x84   : > { %966 = vmatpush.bf16.msrb.mxu2 %v2298_v7 }
  0x85   : > { %940 = vmatpush.bf16.msrb.mxu0 %v2304_v11  ;;  %979 = vmatpush.bf16.msrb.mxu3 %v2307_v12 }
  0x86   : > { %796 = vmatmul.bf16.vlgmr.msra.gmra.mxu1 %v2104_v15 }
  0x87   : > { %950 = vmatpush.bf16.msra.mxu1 %v2259_v36 }
  0x88   : > { %967 = vmatpush.bf16.msrb.mxu2 %v2314_v18 }
  0x89   : > { %941 = vmatpush.bf16.msrb.mxu0 %v2317_v19  ;;  %980 = vmatpush.bf16.msrb.mxu3 %v2326_v25 }
  0x8b   : > { %951 = vmatpush.bf16.msra.mxu1 %v2277_v49 }
  0x8c   : > { %968 = vmatpush.bf16.msrb.mxu2 %v2337_v38 }
  0x8d   : > { %942 = vmatpush.bf16.msrb.mxu0 %v2332_v20  ;;  %981 = vmatpush.bf16.msrb.mxu3 %v2339_v41 }
  0x8f   : > { %952 = vmatpush.bf16.msra.mxu1 %v2289_v62 }
  0x90   : > { %969 = vmatpush.bf16.msrb.mxu2 %v2345_v51 }
  0x91   : > { %943 = vmatpush.bf16.msrb.mxu0 %v2348_v52  ;;  %982 = vmatpush.bf16.msrb.mxu3 %v2351_v56 }
  0x93   : > { %953 = vmatpush.bf16.msra.mxu1 %v2301_v10 }
  0x94   : > { %970 = vmatpush.bf16.msrb.mxu2 %v2355_v0 }
  0x95   : > { %944 = vmatpush.bf16.msrb.mxu0 %v2358_v3  ;;  %983 = vmatpush.bf16.msrb.mxu3 %v2361_v4 }
  0x97   : > { %954 = vmatpush.bf16.msra.mxu1 %v2334_v33 }
  0x9b   : > { %955 = vmatpush.bf16.msra.mxu1 %v2342_v45 }
  0x9f   : > { %956 = vmatpush.bf16.msra.mxu1 %v2371_v9 }
  0xa3   : > { %957 = vmatpush.bf16.msra.mxu1 %v2377_v16 }
  0xb3   : > { %v435_v21 = vpop.f32.mrf.mxu0  ;;  %v450_v22 = vpop.f32.mrf.mxu1 }
  0xb4   : > { %v2455_v23 = vadd.f32 %v450_v22, %v2452_v17 }
  0xba   : > { %v493_v27 = vpop.f32.mrf.mxu2 }
  0xbb   : > { %v494_v29 = vadd.f32 %v493_v27, %v2457_v24  ;;  %v522_v31 = vpop.f32.mrf.mxu3  ;;  %v437_v32 = vpop.f32.mrf.mxu0 }
  0xbc   : > { %v523_v34 = vadd.f32 %v522_v31, %v2459_v26  ;;  %v438_v35 = vadd.f32 %v437_v32, %v2452_v17  ;;  %v2464_v37 = vpop.f32.mrf.mxu1 }
  0xbe   : > { %v2466_v42 = vpack.c.bf16 %v523_v34, %v494_v29 }
  0xc2   : > { %v495_v43 = vpop.f32.mrf.mxu2 }
  0xc3   : > { %v496_v44 = vadd.f32 %v495_v43, %v2457_v24  ;;  %v524_v47 = vpop.f32.mrf.mxu3  ;;  %v440_v48 = vpop.f32.mrf.mxu0 }
  0xc4   : > { %v525_v50 = vadd.f32 %v524_v47, %v2459_v26  ;;  %v441_v55 = vadd.f32 %v440_v48, %v2452_v17  ;;  %v464_v57 = vpop.f32.mrf.mxu1 }
  0xc6   : > { %v2471_v58 = vpack.c.bf16 %v525_v50, %v496_v44 }
  0xca   : > { %v498_v60 = vpop.f32.mrf.mxu2 }
  0xcb   : > { %v499_v63 = vadd.f32 %v498_v60, %v2457_v24  ;;  %v527_v5 = vpop.f32.mrf.mxu3  ;;  %v442_v6 = vpop.f32.mrf.mxu0 }
  0xcc   : > { %v528_v8 = vadd.f32 %v527_v5, %v2459_v26  ;;  %v443_v13 = vadd.f32 %v442_v6, %v2452_v17  ;;  %v466_v14 = vpop.f32.mrf.mxu1 }
  0xcd   : > { %v467_v15 = vadd.f32 %v466_v14, %v2473_v61 }
  0xce   : > { %v2479_v22 = vpack.c.bf16 %v528_v8, %v499_v63 }
  0xcf   : > { %v2481_v27 = vpack.c.bf16 %v467_v15, %v438_v35 }
  0xd2   : > { %v500_v29 = vpop.f32.mrf.mxu2 }
  0xd3   : > { %v501_v31 = vadd.f32 %v500_v29, %v2457_v24  ;;  %v529_v28 = vpop.f32.mrf.mxu3  ;;  %v445_v32 = vpop.f32.mrf.mxu0 }
  0xd4   : > { %v530_v34 = vadd.f32 %v529_v28, %v2459_v26  ;;  %v446_v43 = vadd.f32 %v445_v32, %v2452_v17  ;;  %v469_v44 = vpop.f32.mrf.mxu1 }
  0xd5   : > { %v470_v47 = vadd.f32 %v469_v44, %v2473_v61 }
  0xd6   : > { %v2487_v48 = vpack.c.bf16 %v530_v34, %v501_v31 }
  0xd7   : > { %v2489_v50 = vpack.c.bf16 %v470_v47, %v441_v55 }
  0xd8   : > { %2815 = vst [vmem:[#allocation10_spill] sm:$0xff] %v2487_v48 }
  0xda   : > { %v503_v60 = vpop.f32.mrf.mxu2 }
  0xdb   : > { %v504_v35 = vadd.f32 %v503_v60, %v2457_v24  ;;  %v532_v63 = vpop.f32.mrf.mxu3  ;;  %v447_v5 = vpop.f32.mrf.mxu0 }
  0xdc   : > { %v533_v6 = vadd.f32 %v532_v63, %v2459_v26  ;;  %v448_v8 = vadd.f32 %v447_v5, %v2452_v17  ;;  %v471_v14 = vpop.f32.mrf.mxu1  ;;  %v436_v5 = vadd.f32 %v435_v21, %v2452_v17 }
  0xdd   : > { %v472_v15 = vadd.f32 %v471_v14, %v2473_v61  ;;  %v465_v14 = vadd.f32 %v464_v57, %v2473_v61 }
  0xde   : > { %v2495_v29 = vpack.c.bf16 %v533_v6, %v504_v35 }
  0xdf   : > { %v2497_v28 = vpack.c.bf16 %v472_v15, %v443_v13  ;;  %v542_v6 = vpack.c.bf16 %v465_v14, %v436_v5 }
  0xe0   : > { %2816 = vst [vmem:[#allocation11_spill] sm:$0xff] %v2495_v29 }
  0xe1   : > { %2817 = vst [vmem:[#allocation12_spill] sm:$0xff] %v2497_v28 }
  0xe2   : > { %v505_v31 = vpop.f32.mrf.mxu2 }
  0xe3   : > { %v506_v55 = vadd.f32 %v505_v31, %v2457_v24  ;;  %v534_v32 = vpop.f32.mrf.mxu3  ;;  %v784_v34 = vpop.f32.mrf.mxu0 }
  0xe4   : > { %v535_v44 = vadd.f32 %v534_v32, %v2459_v26  ;;  %v474_v47 = vpop.f32.mrf.mxu1 }
  0xe5   : > { %v475_v60 = vadd.f32 %v474_v47, %v2473_v61 }
  0xe6   : > { %v2502_v63 = vpack.c.bf16 %v535_v44, %v506_v55  ;;  %v611_v55 = vunpack.c.l.bf16 %v542_v6 }
  0xe7   : > { %v2506_v35 = vpack.c.bf16 %v475_v60, %v446_v43 }
  0xe8   : > { %v827_v21 = vadd.f32 %v784_v34, %v611_v55 }
  0xea   : > { %v508_v13 = vpop.f32.mrf.mxu2  ;;  %1922 = vtanh.f32 %v827_v21 }
  0xeb   : > { %v509_v15 = vadd.f32 %v508_v13, %v2457_v24  ;;  %v537_v31 = vpop.f32.mrf.mxu3  ;;  %v786_v29 = vpop.f32.mrf.mxu0 }
  0xec   : > { %v538_v48 = vadd.f32 %v537_v31, %v2459_v26  ;;  %v476_v32 = vpop.f32.mrf.mxu1 }
  0xed   : > { %v477_v28 = vadd.f32 %v476_v32, %v2473_v61 }
  0xee   : > { %v2511_v47 = vpack.c.bf16 %v538_v48, %v509_v15  ;;  %v613_v48 = vunpack.c.l.bf16 %v2466_v42 }
  0xef   : > { %v2513_v44 = vpack.c.bf16 %v477_v28, %v448_v8 }
  0xf0   : > { %2818 = vst [vmem:[#allocation13_spill] sm:$0xff] %v2511_v47  ;;  %v1923_v28 = vpop.eup %1922 }
  0xf1   : > { %v835_v55 = vmul.f32 0.5, %v1923_v28 }
  0xf2   : > { %v510_v57 = vpop.f32.mrf.mxu2 }
  0xf3   : > { %v511_v43 = vadd.f32 %v510_v57, %v2457_v24  ;;  %v539_v60 = vpop.f32.mrf.mxu3  ;;  %v453_v24 = vadd.f32 %v2464_v37, %v2452_v17  ;;  %v836_v57 = vadd.f32 0.5, %v835_v55 }
  0xf4   : > { %v540_v5 = vadd.f32 %v539_v60, %v2459_v26  ;;  %v479_v14 = vpop.f32.mrf.mxu1  ;;  %v612_v60 = vunpack.c.h.bf16 %v542_v6 }
  0xf5   : > { %v480_v29 = vadd.f32 %v479_v14, %v2473_v61 }
  0xf6   : > { %v2518_v13 = vpack.c.bf16 %v540_v5, %v511_v43 }
  0xf7   : > { %v2521_v31 = vpack.c.bf16 %v480_v29, %v2455_v23 }
  0xf8   : > { %2819 = vst [vmem:[#allocation14_spill] sm:$0xff] %v2518_v13 }
  0xfa   : > { %v810_v8 = vpop.f32.mrf.mxu2 }
  0xfb   : > { %v829_v34 = vadd.f32 %v810_v8, %v613_v48  ;;  %v823_v15 = vpop.f32.mrf.mxu3  ;;  %v614_v48 = vunpack.c.h.bf16 %v2466_v42  ;;  %v851_v42 = vunpack.c.l.bf16 %v2481_v27 }
  0xfc   : > { %v481_v32 = vpop.f32.mrf.mxu1 }
  0xfd   : > { %1924 = vtanh.f32 %v829_v34  ;;  %v482_v26 = vadd.f32 %v481_v32, %v2473_v61  ;;  %v830_v8 = vadd.f32 %v823_v15, %v614_v48 }
  0xff   : > { %v2527_v21 = vpack.c.bf16 %v482_v26, %v453_v24 }
 0x102   : > { %v812_v43 = vpop.f32.mrf.mxu2 }
 0x103   : > { %v1925_v23 = vpop.eup %1924  ;;  %v825_v5 = vpop.f32.mrf.mxu3 }
 0x104   : > { %v797_v14 = vpop.f32.mrf.mxu1  ;;  %v842_v29 = vmul.f32 %v1925_v23, %v836_v57 }
 0x105   : > { %v828_v13 = vadd.f32 %v797_v14, %v612_v60  ;;  %v853_v60 = vunpack.c.l.bf16 %v2471_v58  ;;  %v854_v14 = vunpack.c.h.bf16 %v2471_v58 }
 0x107   : > { %1926 = vtanh.f32 %v828_v13 }
 0x108   : > { %1928 = vtanh.f32 %v830_v8 }
 0x10c   : > { %v799_v47 = vpop.f32.mrf.mxu1 }
 0x10d   : > { %v1927_v17 = vpop.eup %1926  ;;  %v852_v47 = vunpack.c.h.bf16 %v2481_v27 }
 0x10e   : > { %v837_v37 = vmul.f32 0.5, %v1927_v17  ;;  %v1929_v34 = vpop.eup %1928 }
 0x10f   : > { %v839_v6 = vmul.f32 0.5, %v1929_v34 }
 0x110   : > { %v838_v61 = vadd.f32 0.5, %v837_v37 }
 0x111   : > { %v840_v24 = vadd.f32 0.5, %v839_v6 }
 0x112   : > { %v841_v28 = vmul.f32 0.0, %v838_v61 }
 0x114   : > { %v2530_v32 = vadd.f32 %v842_v29, %v841_v28 }
 0x116   : > { %1930 = vtanh.f32 %v2530_v32 }
 0x11c   : > { %v1931_v26 = vpop.eup %1930 }
 0x11d   : > { %v845_v55 = vmul.f32 %v1931_v26, %v840_v24 }
 0x11f   : > { %v855_v57 = vpack.c.bf16 %v845_v55, %v845_v55 }
 0x121   : > { %864 = vmatmul.bf16.vlgmr.msra.gmra.mxu0 %v855_v57  ;;  %877 = vmatmul.bf16.vlgmr.msrb.gmra.mxu1 %v855_v57 }
 0x122   : > { %890 = vmatmul.bf16.vlgmr.msra.gmra.mxu2 %v855_v57  ;;  %903 = vmatmul.bf16.vlgmr.msra.gmra.mxu3 %v855_v57 }
 0x123   : > { %1018 = vmatpush.bf16.msra.mxu0 %v2262_v39  ;;  %1031 = vmatpush.bf16.msrb.mxu1 %v2259_v36 }
 0x124   : > { %1044 = vmatpush.bf16.msra.mxu2 %v2257_v30  ;;  %1057 = vmatpush.bf16.msra.mxu3 %v2264_v40 }
 0x127   : > { %1019 = vmatpush.bf16.msra.mxu0 %v2280_v53  ;;  %1032 = vmatpush.bf16.msrb.mxu1 %v2277_v49 }
 0x128   : > { %1045 = vmatpush.bf16.msra.mxu2 %v2270_v46  ;;  %1058 = vmatpush.bf16.msra.mxu3 %v2283_v54 }
 0x12b   : > { %1020 = vmatpush.bf16.msra.mxu0 %v2292_v1  ;;  %1033 = vmatpush.bf16.msrb.mxu1 %v2289_v62 }
 0x12c   : > { %1046 = vmatpush.bf16.msra.mxu2 %v2286_v59  ;;  %1059 = vmatpush.bf16.msra.mxu3 %v2295_v2 }
 0x12f   : > { %1021 = vmatpush.bf16.msra.mxu0 %v2304_v11  ;;  %1034 = vmatpush.bf16.msrb.mxu1 %v2301_v10 }
 0x130   : > { %1047 = vmatpush.bf16.msra.mxu2 %v2298_v7  ;;  %1060 = vmatpush.bf16.msra.mxu3 %v2307_v12 }
 0x133   : > { %1022 = vmatpush.bf16.msra.mxu0 %v2317_v19  ;;  %1035 = vmatpush.bf16.msrb.mxu1 %v2334_v33 }
 0x134   : > { %1048 = vmatpush.bf16.msra.mxu2 %v2314_v18  ;;  %1061 = vmatpush.bf16.msra.mxu3 %v2326_v25 }
 0x137   : > { %1023 = vmatpush.bf16.msra.mxu0 %v2332_v20  ;;  %1036 = vmatpush.bf16.msrb.mxu1 %v2342_v45 }
 0x138   : > { %1049 = vmatpush.bf16.msra.mxu2 %v2337_v38  ;;  %1062 = vmatpush.bf16.msra.mxu3 %v2339_v41 }
 0x13b   : > { %1024 = vmatpush.bf16.msra.mxu0 %v2348_v52  ;;  %1037 = vmatpush.bf16.msrb.mxu1 %v2371_v9 }
 0x13c   : > { %1050 = vmatpush.bf16.msra.mxu2 %v2345_v51  ;;  %1063 = vmatpush.bf16.msra.mxu3 %v2351_v56 }
 0x13f   : > { %1025 = vmatpush.bf16.msra.mxu0 %v2358_v3  ;;  %1038 = vmatpush.bf16.msrb.mxu1 %v2377_v16 }
 0x140   : > { %1051 = vmatpush.bf16.msra.mxu2 %v2355_v0  ;;  %1064 = vmatpush.bf16.msra.mxu3 %v2361_v4 }
 0x19e   : > { %v865_v13 = vpop.f32.mrf.mxu0  ;;  %v878_v15 = vpop.f32.mrf.mxu1 }
 0x19f   : > { %v908_v43 = vadd.f32 %v865_v13, %v851_v42  ;;  %v909_v23 = vadd.f32 %v878_v15, %v852_v47 }
 0x1a1   : > { %1932 = vtanh.f32 %v908_v43 }
 0x1a2   : > { %1934 = vtanh.f32 %v909_v23 }
 0x1a5   : > { %v891_v5 = vpop.f32.mrf.mxu2  ;;  %v904_v29 = vpop.f32.mrf.mxu3 }
 0x1a6   : > { %v910_v48 = vadd.f32 %v891_v5, %v853_v60  ;;  %v867_v8 = vpop.f32.mrf.mxu0  ;;  %v880_v17 = vpop.f32.mrf.mxu1  ;;  %v911_v61 = vadd.f32 %v904_v29, %v854_v14  ;;  %v933_v14 = vunpack.c.h.bf16 %v2489_v50 }
 0x1a7   : > { %v1933_v37 = vpop.eup %1932 }
 0x1a8   : > { %v1935_v28 = vpop.eup %1934  ;;  %1936 = vtanh.f32 %v910_v48  ;;  %v916_v27 = vmul.f32 0.5, %v1933_v37  ;;  %v934_v37 = vunpack.c.l.bf16 %v2479_v22 }
 0x1a9   : > { %v918_v34 = vmul.f32 0.5, %v1935_v28  ;;  %1938 = vtanh.f32 %v911_v61  ;;  %v935_v28 = vunpack.c.h.bf16 %v2479_v22 }
 0x1aa   : > { %v917_v24 = vadd.f32 0.5, %v916_v27 }
 0x1ab   : > { %v919_v6 = vadd.f32 0.5, %v918_v34 }
 0x1ad   : > { %v893_v26 = vpop.f32.mrf.mxu2  ;;  %v906_v55 = vpop.f32.mrf.mxu3  ;;  %v922_v42 = vmul.f32 %v919_v6, %v2530_v32  ;;  %v932_v32 = vunpack.c.l.bf16 %v2489_v50 }
 0x1ae   : > { %v1937_v57 = vpop.eup %1936 }
 0x1af   : > { %v923_v47 = vmul.f32 %v1937_v57, %v917_v24  ;;  %v1939_v58 = vpop.eup %1938 }
 0x1b0   : > { %v920_v15 = vmul.f32 0.5, %v1939_v58 }
 0x1b1   : > { %v2570_v13 = vadd.f32 %v923_v47, %v922_v42 }
 0x1b2   : > { %v921_v43 = vadd.f32 0.5, %v920_v15 }
 0x1b3   : > { %1940 = vtanh.f32 %v2570_v13 }
 0x1b9   : > { %v1941_v23 = vpop.eup %1940 }
 0x1ba   : > { %v926_v60 = vmul.f32 %v1941_v23, %v921_v43 }
 0x1bc   : > { %v936_v5 = vpack.c.bf16 %v926_v60, %v926_v60 }
 0x1be   : > { %945 = vmatmul.bf16.vlgmr.msrb.gmra.mxu0 %v936_v5  ;;  %958 = vmatmul.bf16.vlgmr.msra.gmra.mxu1 %v936_v5 }
 0x1bf   : > { %971 = vmatmul.bf16.vlgmr.msrb.gmra.mxu2 %v936_v5  ;;  %984 = vmatmul.bf16.vlgmr.msrb.gmra.mxu3 %v936_v5 }
 0x1c0   : > { %1099 = vmatpush.bf16.msrb.mxu0 %v2262_v39  ;;  %1112 = vmatpush.bf16.msra.mxu1 %v2259_v36 }
 0x1c1   : > { %1125 = vmatpush.bf16.msrb.mxu2 %v2257_v30  ;;  %1138 = vmatpush.bf16.msrb.mxu3 %v2264_v40 }
 0x1c4   : > { %1100 = vmatpush.bf16.msrb.mxu0 %v2280_v53  ;;  %1113 = vmatpush.bf16.msra.mxu1 %v2277_v49 }
 0x1c5   : > { %1126 = vmatpush.bf16.msrb.mxu2 %v2270_v46  ;;  %1139 = vmatpush.bf16.msrb.mxu3 %v2283_v54 }
 0x1c8   : > { %1101 = vmatpush.bf16.msrb.mxu0 %v2292_v1  ;;  %1114 = vmatpush.bf16.msra.mxu1 %v2289_v62 }
 0x1c9   : > { %1127 = vmatpush.bf16.msrb.mxu2 %v2286_v59  ;;  %1140 = vmatpush.bf16.msrb.mxu3 %v2295_v2 }
 0x1cc   : > { %1102 = vmatpush.bf16.msrb.mxu0 %v2304_v11  ;;  %1115 = vmatpush.bf16.msra.mxu1 %v2301_v10 }
 0x1cd   : > { %1128 = vmatpush.bf16.msrb.mxu2 %v2298_v7  ;;  %1141 = vmatpush.bf16.msrb.mxu3 %v2307_v12 }
 0x1d0   : > { %1103 = vmatpush.bf16.msrb.mxu0 %v2317_v19  ;;  %1116 = vmatpush.bf16.msra.mxu1 %v2334_v33 }
 0x1d1   : > { %1129 = vmatpush.bf16.msrb.mxu2 %v2314_v18  ;;  %1142 = vmatpush.bf16.msrb.mxu3 %v2326_v25 }
 0x1d4   : > { %1104 = vmatpush.bf16.msrb.mxu0 %v2332_v20  ;;  %1117 = vmatpush.bf16.msra.mxu1 %v2342_v45 }
 0x1d5   : > { %1130 = vmatpush.bf16.msrb.mxu2 %v2337_v38  ;;  %1143 = vmatpush.bf16.msrb.mxu3 %v2339_v41 }
 0x1d8   : > { %1105 = vmatpush.bf16.msrb.mxu0 %v2348_v52  ;;  %1118 = vmatpush.bf16.msra.mxu1 %v2371_v9 }
 0x1d9   : > { %1131 = vmatpush.bf16.msrb.mxu2 %v2345_v51  ;;  %1144 = vmatpush.bf16.msrb.mxu3 %v2351_v56 }
 0x1dc   : > { %1106 = vmatpush.bf16.msrb.mxu0 %v2358_v3  ;;  %1119 = vmatpush.bf16.msra.mxu1 %v2377_v16 }
 0x1dd   : > { %1132 = vmatpush.bf16.msrb.mxu2 %v2355_v0  ;;  %1145 = vmatpush.bf16.msrb.mxu3 %v2361_v4 }
 0x23b   : > { %v946_v29 = vpop.f32.mrf.mxu0  ;;  %v959_v48 = vpop.f32.mrf.mxu1 }
 0x23c   : > { %v989_v8 = vadd.f32 %v946_v29, %v932_v32  ;;  %v990_v17 = vadd.f32 %v959_v48, %v933_v14 }
 0x23e   : > { %1942 = vtanh.f32 %v989_v8 }
 0x23f   : > { %1944 = vtanh.f32 %v990_v17 }
 0x242   : > { %v972_v61 = vpop.f32.mrf.mxu2  ;;  %v985_v27 = vpop.f32.mrf.mxu3 }
 0x243   : > { %v991_v34 = vadd.f32 %v972_v61, %v934_v37  ;;  %v948_v6 = vpop.f32.mrf.mxu0  ;;  %v961_v24 = vpop.f32.mrf.mxu1  ;;  %v992_v55 = vadd.f32 %v985_v27, %v935_v28 }
 0x244   : > { %v1943_v26 = vpop.eup %1942  ;;  %v2821_v24 = vld [vmem:[#allocation10_spill] sm:$0xff] }
 0x245   : > { %v1945_v57 = vpop.eup %1944  ;;  %1946 = vtanh.f32 %v991_v34  ;;  %v997_v50 = vmul.f32 0.5, %v1943_v26  ;;  %v1015_v26 = vunpack.c.l.bf16 %v2821_v24 }
 0x246   : > { %v999_v42 = vmul.f32 0.5, %v1945_v57  ;;  %1948 = vtanh.f32 %v992_v55  ;;  %v1016_v57 = vunpack.c.h.bf16 %v2821_v24 }
 0x247   : > { %v998_v58 = vadd.f32 0.5, %v997_v50 }
 0x248   : > { %v1000_v47 = vadd.f32 0.5, %v999_v42 }
 0x24a   : > { %v974_v15 = vpop.f32.mrf.mxu2  ;;  %v987_v43 = vpop.f32.mrf.mxu3  ;;  %v1003_v60 = vmul.f32 %v1000_v47, %v2570_v13  ;;  %v2820_v13 = vld [vmem:[#allocation12_spill] sm:$0xff] }
 0x24b   : > { %v1947_v23 = vpop.eup %1946  ;;  %v1013_v37 = vunpack.c.l.bf16 %v2820_v13  ;;  %v1014_v61 = vunpack.c.h.bf16 %v2820_v13 }
 0x24c   : > { %v1004_v5 = vmul.f32 %v1947_v23, %v998_v58  ;;  %v1949_v22 = vpop.eup %1948 }
 0x24d   : > { %v1001_v14 = vmul.f32 0.5, %v1949_v22 }
 0x24e   : > { %v2610_v32 = vadd.f32 %v1004_v5, %v1003_v60 }
 0x24f   : > { %v1002_v29 = vadd.f32 0.5, %v1001_v14 }
 0x250   : > { %1950 = vtanh.f32 %v2610_v32 }
 0x256   : > { %v1951_v48 = vpop.eup %1950 }
 0x257   : > { %v1007_v8 = vmul.f32 %v1951_v48, %v1002_v29 }
 0x259   : > { %v1017_v17 = vpack.c.bf16 %v1007_v8, %v1007_v8 }
 0x25b   : > { %1026 = vmatmul.bf16.vlgmr.msra.gmra.mxu0 %v1017_v17  ;;  %1039 = vmatmul.bf16.vlgmr.msrb.gmra.mxu1 %v1017_v17 }
 0x25c   : > { %1052 = vmatmul.bf16.vlgmr.msra.gmra.mxu2 %v1017_v17  ;;  %1065 = vmatmul.bf16.vlgmr.msra.gmra.mxu3 %v1017_v17 }
 0x25d   : > { %1180 = vmatpush.bf16.msra.mxu0 %v2262_v39  ;;  %1193 = vmatpush.bf16.msrb.mxu1 %v2259_v36 }
 0x25e   : > { %1206 = vmatpush.bf16.msra.mxu2 %v2257_v30  ;;  %1219 = vmatpush.bf16.msra.mxu3 %v2264_v40 }
 0x261   : > { %1181 = vmatpush.bf16.msra.mxu0 %v2280_v53  ;;  %1194 = vmatpush.bf16.msrb.mxu1 %v2277_v49 }
 0x262   : > { %1207 = vmatpush.bf16.msra.mxu2 %v2270_v46  ;;  %1220 = vmatpush.bf16.msra.mxu3 %v2283_v54 }
 0x265   : > { %1182 = vmatpush.bf16.msra.mxu0 %v2292_v1  ;;  %1195 = vmatpush.bf16.msrb.mxu1 %v2289_v62 }
 0x266   : > { %1208 = vmatpush.bf16.msra.mxu2 %v2286_v59  ;;  %1221 = vmatpush.bf16.msra.mxu3 %v2295_v2 }
 0x269   : > { %1183 = vmatpush.bf16.msra.mxu0 %v2304_v11  ;;  %1196 = vmatpush.bf16.msrb.mxu1 %v2301_v10 }
 0x26a   : > { %1209 = vmatpush.bf16.msra.mxu2 %v2298_v7  ;;  %1222 = vmatpush.bf16.msra.mxu3 %v2307_v12 }
 0x26d   : > { %1184 = vmatpush.bf16.msra.mxu0 %v2317_v19  ;;  %1197 = vmatpush.bf16.msrb.mxu1 %v2334_v33 }
 0x26e   : > { %1210 = vmatpush.bf16.msra.mxu2 %v2314_v18  ;;  %1223 = vmatpush.bf16.msra.mxu3 %v2326_v25 }
 0x271   : > { %1185 = vmatpush.bf16.msra.mxu0 %v2332_v20  ;;  %1198 = vmatpush.bf16.msrb.mxu1 %v2342_v45 }
 0x272   : > { %1211 = vmatpush.bf16.msra.mxu2 %v2337_v38  ;;  %1224 = vmatpush.bf16.msra.mxu3 %v2339_v41 }
 0x275   : > { %1186 = vmatpush.bf16.msra.mxu0 %v2348_v52  ;;  %1199 = vmatpush.bf16.msrb.mxu1 %v2371_v9 }
 0x276   : > { %1212 = vmatpush.bf16.msra.mxu2 %v2345_v51  ;;  %1225 = vmatpush.bf16.msra.mxu3 %v2351_v56 }
 0x279   : > { %1187 = vmatpush.bf16.msra.mxu0 %v2358_v3  ;;  %1200 = vmatpush.bf16.msrb.mxu1 %v2377_v16 }
 0x27a   : > { %1213 = vmatpush.bf16.msra.mxu2 %v2355_v0  ;;  %1226 = vmatpush.bf16.msra.mxu3 %v2361_v4 }
 0x2d8   : > { %v1027_v28 = vpop.f32.mrf.mxu0  ;;  %v1040_v27 = vpop.f32.mrf.mxu1 }
 0x2d9   : > { %v1070_v34 = vadd.f32 %v1027_v28, %v1013_v37  ;;  %v1071_v6 = vadd.f32 %v1040_v27, %v1014_v61 }
 0x2db   : > { %1952 = vtanh.f32 %v1070_v34 }
 0x2dc   : > { %1954 = vtanh.f32 %v1071_v6 }
 0x2df   : > { %v1053_v55 = vpop.f32.mrf.mxu2  ;;  %v1066_v50 = vpop.f32.mrf.mxu3 }
 0x2e0   : > { %v1072_v42 = vadd.f32 %v1053_v55, %v1015_v26  ;;  %v1029_v47 = vpop.f32.mrf.mxu0  ;;  %v1042_v58 = vpop.f32.mrf.mxu1  ;;  %v1073_v43 = vadd.f32 %v1066_v50, %v1016_v57  ;;  %v1095_v26 = vunpack.c.h.bf16 %v2506_v35 }
 0x2e1   : > { %v1953_v15 = vpop.eup %1952  ;;  %v2822_v47 = vld [vmem:[#allocation11_spill] sm:$0xff] }
 0x2e2   : > { %v1955_v23 = vpop.eup %1954  ;;  %1956 = vtanh.f32 %v1072_v42  ;;  %v1078_v60 = vmul.f32 0.5, %v1953_v15  ;;  %v1096_v58 = vunpack.c.l.bf16 %v2822_v47 }
 0x2e3   : > { %v1080_v5 = vmul.f32 0.5, %v1955_v23  ;;  %1958 = vtanh.f32 %v1073_v43  ;;  %v1097_v43 = vunpack.c.h.bf16 %v2822_v47 }
 0x2e4   : > { %v1079_v14 = vadd.f32 0.5, %v1078_v60 }
 0x2e5   : > { %v1081_v22 = vadd.f32 0.5, %v1080_v5 }
 0x2e7   : > { %v1055_v29 = vpop.f32.mrf.mxu2  ;;  %v1068_v48 = vpop.f32.mrf.mxu3  ;;  %v1084_v17 = vmul.f32 %v1081_v22, %v2610_v32  ;;  %v1094_v32 = vunpack.c.l.bf16 %v2506_v35 }
 0x2e8   : > { %v1957_v8 = vpop.eup %1956 }
 0x2e9   : > { %v1085_v13 = vmul.f32 %v1957_v8, %v1079_v14  ;;  %v1959_v37 = vpop.eup %1958 }
 0x2ea   : > { %v1082_v28 = vmul.f32 0.5, %v1959_v37 }
 0x2eb   : > { %v2650_v61 = vadd.f32 %v1085_v13, %v1084_v17 }
 0x2ec   : > { %v1083_v27 = vadd.f32 0.5, %v1082_v28 }
 0x2ed   : > { %1960 = vtanh.f32 %v2650_v61 }
 0x2f3   : > { %v1961_v34 = vpop.eup %1960 }
 0x2f4   : > { %v1088_v6 = vmul.f32 %v1961_v34, %v1083_v27 }
 0x2f6   : > { %v1098_v24 = vpack.c.bf16 %v1088_v6, %v1088_v6 }
 0x2f8   : > { %1107 = vmatmul.bf16.vlgmr.msrb.gmra.mxu0 %v1098_v24  ;;  %1120 = vmatmul.bf16.vlgmr.msra.gmra.mxu1 %v1098_v24 }
 0x2f9   : > { %1133 = vmatmul.bf16.vlgmr.msrb.gmra.mxu2 %v1098_v24  ;;  %1146 = vmatmul.bf16.vlgmr.msrb.gmra.mxu3 %v1098_v24 }
 0x2fa   : > { %1261 = vmatpush.bf16.msrb.mxu0 %v2262_v39  ;;  %1274 = vmatpush.bf16.msra.mxu1 %v2259_v36 }
 0x2fb   : > { %1287 = vmatpush.bf16.msrb.mxu2 %v2257_v30  ;;  %1300 = vmatpush.bf16.msrb.mxu3 %v2264_v40 }
 0x2fe   : > { %1262 = vmatpush.bf16.msrb.mxu0 %v2280_v53  ;;  %1275 = vmatpush.bf16.msra.mxu1 %v2277_v49 }
 0x2ff   : > { %1288 = vmatpush.bf16.msrb.mxu2 %v2270_v46  ;;  %1301 = vmatpush.bf16.msrb.mxu3 %v2283_v54 }
 0x302   : > { %1263 = vmatpush.bf16.msrb.mxu0 %v2292_v1  ;;  %1276 = vmatpush.bf16.msra.mxu1 %v2289_v62 }
 0x303   : > { %1289 = vmatpush.bf16.msrb.mxu2 %v2286_v59  ;;  %1302 = vmatpush.bf16.msrb.mxu3 %v2295_v2 }
 0x306   : > { %1264 = vmatpush.bf16.msrb.mxu0 %v2304_v11  ;;  %1277 = vmatpush.bf16.msra.mxu1 %v2301_v10 }
 0x307   : > { %1290 = vmatpush.bf16.msrb.mxu2 %v2298_v7  ;;  %1303 = vmatpush.bf16.msrb.mxu3 %v2307_v12 }
 0x30a   : > { %1265 = vmatpush.bf16.msrb.mxu0 %v2317_v19  ;;  %1278 = vmatpush.bf16.msra.mxu1 %v2334_v33 }
 0x30b   : > { %1291 = vmatpush.bf16.msrb.mxu2 %v2314_v18  ;;  %1304 = vmatpush.bf16.msrb.mxu3 %v2326_v25 }
 0x30e   : > { %1266 = vmatpush.bf16.msrb.mxu0 %v2332_v20  ;;  %1279 = vmatpush.bf16.msra.mxu1 %v2342_v45 }
 0x30f   : > { %1292 = vmatpush.bf16.msrb.mxu2 %v2337_v38  ;;  %1305 = vmatpush.bf16.msrb.mxu3 %v2339_v41 }
 0x312   : > { %1267 = vmatpush.bf16.msrb.mxu0 %v2348_v52  ;;  %1280 = vmatpush.bf16.msra.mxu1 %v2371_v9 }
 0x313   : > { %1293 = vmatpush.bf16.msrb.mxu2 %v2345_v51  ;;  %1306 = vmatpush.bf16.msrb.mxu3 %v2351_v56 }
 0x316   : > { %1268 = vmatpush.bf16.msrb.mxu0 %v2358_v3  ;;  %1281 = vmatpush.bf16.msra.mxu1 %v2377_v16 }
 0x317   : > { %1294 = vmatpush.bf16.msrb.mxu2 %v2355_v0  ;;  %1307 = vmatpush.bf16.msrb.mxu3 %v2361_v4 }
 0x375   : > { %v1108_v55 = vpop.f32.mrf.mxu0  ;;  %v1121_v57 = vpop.f32.mrf.mxu1 }
 0x376   : > { %v1151_v50 = vadd.f32 %v1108_v55, %v1094_v32  ;;  %v1152_v42 = vadd.f32 %v1121_v57, %v1095_v26 }
 0x378   : > { %1962 = vtanh.f32 %v1151_v50 }
 0x379   : > { %1964 = vtanh.f32 %v1152_v42 }
 0x37c   : > { %v1134_v15 = vpop.f32.mrf.mxu2  ;;  %v1147_v23 = vpop.f32.mrf.mxu3 }
 0x37d   : > { %v1153_v60 = vadd.f32 %v1134_v15, %v1096_v58  ;;  %v1110_v5 = vpop.f32.mrf.mxu0  ;;  %v1123_v22 = vpop.f32.mrf.mxu1  ;;  %v1154_v29 = vadd.f32 %v1147_v23, %v1097_v43  ;;  %v2823_v43 = vld [vmem:[#allocation13_spill] sm:$0xff] }
 0x37e   : > { %v1963_v14 = vpop.eup %1962  ;;  %v1258_v23 = vunpack.c.l.bf16 %v2823_v43  ;;  %v1259_v5 = vunpack.c.h.bf16 %v2823_v43 }
 0x37f   : > { %v1965_v48 = vpop.eup %1964  ;;  %1966 = vtanh.f32 %v1153_v60  ;;  %v1159_v35 = vmul.f32 0.5, %v1963_v14 }
 0x380   : > { %v1161_v8 = vmul.f32 0.5, %v1965_v48  ;;  %1968 = vtanh.f32 %v1154_v29 }
 0x381   : > { %v1160_v13 = vadd.f32 0.5, %v1159_v35 }
 0x382   : > { %v1162_v17 = vadd.f32 0.5, %v1161_v8 }
 0x384   : > { %v1136_v37 = vpop.f32.mrf.mxu2  ;;  %v1149_v28 = vpop.f32.mrf.mxu3  ;;  %v1165_v34 = vmul.f32 %v1162_v17, %v2650_v61 }
 0x385   : > { %v1967_v27 = vpop.eup %1966 }
 0x386   : > { %v1166_v6 = vmul.f32 %v1967_v27, %v1160_v13  ;;  %v1969_v24 = vpop.eup %1968 }
 0x387   : > { %v1163_v26 = vmul.f32 0.5, %v1969_v24 }
 0x388   : > { %v2690_v32 = vadd.f32 %v1166_v6, %v1165_v34 }
 0x389   : > { %v1164_v55 = vadd.f32 0.5, %v1163_v26 }
 0x38a   : > { %1970 = vtanh.f32 %v2690_v32 }
 0x390   : > { %v1971_v57 = vpop.eup %1970 }
 0x391   : > { %v1169_v50 = vmul.f32 %v1971_v57, %v1164_v55 }
 0x393   : > { %v1179_v42 = vpack.c.bf16 %v1169_v50, %v1169_v50 }
 0x395   : > { %1188 = vmatmul.bf16.vlgmr.msra.gmra.mxu0 %v1179_v42  ;;  %1201 = vmatmul.bf16.vlgmr.msrb.gmra.mxu1 %v1179_v42 }
 0x396   : > { %1214 = vmatmul.bf16.vlgmr.msra.gmra.mxu2 %v1179_v42  ;;  %1227 = vmatmul.bf16.vlgmr.msra.gmra.mxu3 %v1179_v42 }
 0x397   : > { %1342 = vmatpush.bf16.msra.mxu0 %v2262_v39  ;;  %1355 = vmatpush.bf16.msrb.mxu1 %v2259_v36  ;;  %v1176_v36 = vunpack.c.h.bf16 %v2513_v44 }
 0x398   : > { %1368 = vmatpush.bf16.msra.mxu2 %v2257_v30  ;;  %1381 = vmatpush.bf16.msra.mxu3 %v2264_v40  ;;  %v1175_v30 = vunpack.c.l.bf16 %v2513_v44  ;;  %v1257_v44 = vunpack.c.h.bf16 %v2521_v31 }
 0x39b   : > { %1343 = vmatpush.bf16.msra.mxu0 %v2280_v53  ;;  %1356 = vmatpush.bf16.msrb.mxu1 %v2277_v49  ;;  %v1177_v53 = vunpack.c.l.bf16 %v2502_v63 }
 0x39c   : > { %1369 = vmatpush.bf16.msra.mxu2 %v2270_v46  ;;  %1382 = vmatpush.bf16.msra.mxu3 %v2283_v54 }
 0x39f   : > { %1344 = vmatpush.bf16.msra.mxu0 %v2292_v1  ;;  %1357 = vmatpush.bf16.msrb.mxu1 %v2289_v62 }
 0x3a0   : > { %1370 = vmatpush.bf16.msra.mxu2 %v2286_v59  ;;  %1383 = vmatpush.bf16.msra.mxu3 %v2295_v2  ;;  %v1178_v59 = vunpack.c.h.bf16 %v2502_v63  ;;  %v1256_v63 = vunpack.c.l.bf16 %v2521_v31 }
 0x3a3   : > { %1345 = vmatpush.bf16.msra.mxu0 %v2304_v11  ;;  %1358 = vmatpush.bf16.msrb.mxu1 %v2301_v10 }
 0x3a4   : > { %1371 = vmatpush.bf16.msra.mxu2 %v2298_v7  ;;  %1384 = vmatpush.bf16.msra.mxu3 %v2307_v12 }
 0x3a7   : > { %1346 = vmatpush.bf16.msra.mxu0 %v2317_v19  ;;  %1359 = vmatpush.bf16.msrb.mxu1 %v2334_v33 }
 0x3a8   : > { %1372 = vmatpush.bf16.msra.mxu2 %v2314_v18  ;;  %1385 = vmatpush.bf16.msra.mxu3 %v2326_v25 }
 0x3ab   : > { %1347 = vmatpush.bf16.msra.mxu0 %v2332_v20  ;;  %1360 = vmatpush.bf16.msrb.mxu1 %v2342_v45 }
 0x3ac   : > { %1373 = vmatpush.bf16.msra.mxu2 %v2337_v38  ;;  %1386 = vmatpush.bf16.msra.mxu3 %v2339_v41 }
 0x3af   : > { %1348 = vmatpush.bf16.msra.mxu0 %v2348_v52  ;;  %1361 = vmatpush.bf16.msrb.mxu1 %v2371_v9 }
 0x3b0   : > { %1374 = vmatpush.bf16.msra.mxu2 %v2345_v51  ;;  %1387 = vmatpush.bf16.msra.mxu3 %v2351_v56 }
 0x3b3   : > { %1349 = vmatpush.bf16.msra.mxu0 %v2358_v3  ;;  %1362 = vmatpush.bf16.msrb.mxu1 %v2377_v16 }
 0x3b4   : > { %1375 = vmatpush.bf16.msra.mxu2 %v2355_v0  ;;  %1388 = vmatpush.bf16.msra.mxu3 %v2361_v4 }
 0x412   : > { %v1189_v39 = vpop.f32.mrf.mxu0  ;;  %v1202_v40 = vpop.f32.mrf.mxu1 }
 0x413   : > { %v1232_v46 = vadd.f32 %v1189_v39, %v1175_v30  ;;  %v1233_v49 = vadd.f32 %v1202_v40, %v1176_v36  ;;  %v1865_v39 = vld [vmem:[%s2803_s4 + $0x38] sm:$0xff]  ;;  %v1864_v40 = vld [vmem:[%s2803_s4 + $0x30] sm:$0xff] }
 0x415   : > { %1972 = vtanh.f32 %v1232_v46  ;;  %v1863_v46 = vld [vmem:[%s2803_s4 + $0x28] sm:$0xff] }
 0x416   : > { %1974 = vtanh.f32 %v1233_v49  ;;  %v1862_v49 = vld [vmem:[%s2803_s4 + $0x20] sm:$0xff] }
 0x419   : > { %v1215_v54 = vpop.f32.mrf.mxu2  ;;  %v1228_v62 = vpop.f32.mrf.mxu3 }
 0x41a   : > { %v1234_v1 = vadd.f32 %v1215_v54, %v1177_v53  ;;  %v1191_v2 = vpop.f32.mrf.mxu0  ;;  %v1204_v7 = vpop.f32.mrf.mxu1  ;;  %v1235_v11 = vadd.f32 %v1228_v62, %v1178_v59  ;;  %v1861_v53 = vld [vmem:[%s2803_s4 + $0x18] sm:$0xff]  ;;  %v1860_v54 = vld [vmem:[%s2803_s4 + $0x10] sm:$0xff]  ;;  %v1859_v59 = vld [vmem:[%s2803_s4 + $0x8] sm:$0xff] }
 0x41b   : > { %v1973_v10 = vpop.eup %1972  ;;  %v1858_v62 = vld [vmem:[%s2803_s4] sm:$0xff]  ;;  %v1338_v2 = vunpack.c.h.bf16 %v2527_v21 }
 0x41c   : > { %v1975_v12 = vpop.eup %1974  ;;  %1976 = vtanh.f32 %v1234_v1  ;;  %v1240_v18 = vmul.f32 0.5, %v1973_v10  ;;  %v1337_v1 = vunpack.c.l.bf16 %v2527_v21 }
 0x41d   : > { %v1242_v19 = vmul.f32 0.5, %v1975_v12  ;;  %1978 = vtanh.f32 %v1235_v11 }
 0x41e   : > { %v1241_v20 = vadd.f32 0.5, %v1240_v18  ;;  %v2824_v18 = vld [vmem:[#allocation14_spill] sm:$0xff] }
 0x41f   : > { %v1243_v25 = vadd.f32 0.5, %v1242_v19  ;;  %v1339_v19 = vunpack.c.l.bf16 %v2824_v18 }
 0x421   : > { %v1217_v33 = vpop.f32.mrf.mxu2  ;;  %v1230_v38 = vpop.f32.mrf.mxu3  ;;  %v1246_v45 = vmul.f32 %v1243_v25, %v2690_v32 }
 0x422   : > { %v1977_v41 = vpop.eup %1976 }
 0x423   : > { %v1247_v51 = vmul.f32 %v1977_v41, %v1241_v20  ;;  %v1979_v52 = vpop.eup %1978  ;;  %v1340_v20 = vunpack.c.h.bf16 %v2824_v18 }
 0x424   : > { %v1244_v0 = vmul.f32 0.5, %v1979_v52 }
 0x425   : > { %v1248_v56 = vadd.f32 %v1247_v51, %v1246_v45 }
 0x426   : > { %v1245_v3 = vadd.f32 0.5, %v1244_v0 }
 0x427   : > { %1980 = vtanh.f32 %v1248_v56 }
 0x42d   : > { %v1981_v4 = vpop.eup %1980 }
 0x42e   : > { %v1250_v9 = vmul.f32 %v1981_v4, %v1245_v3 }
 0x430   : > { %v1260_v16 = vpack.c.bf16 %v1250_v9, %v1250_v9 }
 0x432   : > { %1269 = vmatmul.bf16.vlgmr.msrb.gmra.mxu0 %v1260_v16  ;;  %1282 = vmatmul.bf16.vlgmr.msra.gmra.mxu1 %v1260_v16 }
 0x433   : > { %1295 = vmatmul.bf16.vlgmr.msrb.gmra.mxu2 %v1260_v16  ;;  %1308 = vmatmul.bf16.vlgmr.msrb.gmra.mxu3 %v1260_v16 }
 0x434   : > { %1482 = vmatpush.bf16.msrb.mxu0 %v1865_v39 }
 0x438   : > { %1483 = vmatpush.bf16.msrb.mxu0 %v1864_v40 }
 0x43c   : > { %1484 = vmatpush.bf16.msrb.mxu0 %v1863_v46 }
 0x440   : > { %1485 = vmatpush.bf16.msrb.mxu0 %v1862_v49 }
 0x444   : > { %1486 = vmatpush.bf16.msrb.mxu0 %v1861_v53 }
 0x448   : > { %1487 = vmatpush.bf16.msrb.mxu0 %v1860_v54 }
 0x44c   : > { %1488 = vmatpush.bf16.msrb.mxu0 %v1859_v59 }
 0x450   : > { %1489 = vmatpush.bf16.msrb.mxu0 %v1858_v62 }
 0x4af   : > { %v1270_v61 = vpop.f32.mrf.mxu0  ;;  %v1283_v47 = vpop.f32.mrf.mxu1 }
 0x4b0   : > { %v1313_v58 = vadd.f32 %v1270_v61, %v1256_v63  ;;  %v1314_v15 = vadd.f32 %v1283_v47, %v1257_v44 }
 0x4b2   : > { %1982 = vtanh.f32 %v1313_v58 }
 0x4b3   : > { %1984 = vtanh.f32 %v1314_v15 }
 0x4b6   : > { %v1296_v60 = vpop.f32.mrf.mxu2  ;;  %v1309_v22 = vpop.f32.mrf.mxu3 }
 0x4b7   : > { %v1315_v14 = vadd.f32 %v1296_v60, %v1258_v23  ;;  %v1272_v29 = vpop.f32.mrf.mxu0  ;;  %v1285_v48 = vpop.f32.mrf.mxu1  ;;  %v1316_v8 = vadd.f32 %v1309_v22, %v1259_v5  ;;  %v1921_v22 = vld [vmem:[%s2804_s5] ss:$0 sm:$0xff] }
 0x4b8   : > { %v1983_v35 = vpop.eup %1982 }
 0x4b9   : > { %v1985_v17 = vpop.eup %1984  ;;  %1986 = vtanh.f32 %v1315_v14  ;;  %v1321_v31 = vmul.f32 0.5, %v1983_v35 }
 0x4ba   : > { %v1323_v13 = vmul.f32 0.5, %v1985_v17  ;;  %1988 = vtanh.f32 %v1316_v8 }
 0x4bb   : > { %v1322_v28 = vadd.f32 0.5, %v1321_v31 }
 0x4bc   : > { %v1324_v37 = vadd.f32 0.5, %v1323_v13 }
 0x4be   : > { %v1298_v27 = vpop.f32.mrf.mxu2  ;;  %v1311_v34 = vpop.f32.mrf.mxu3  ;;  %v1327_v24 = vmul.f32 %v1324_v37, %v1248_v56 }
 0x4bf   : > { %v1987_v6 = vpop.eup %1986 }
 0x4c0   : > { %v1328_v32 = vmul.f32 %v1987_v6, %v1322_v28  ;;  %v1989_v26 = vpop.eup %1988 }
 0x4c1   : > { %v1325_v57 = vmul.f32 0.5, %v1989_v26 }
 0x4c2   : > { %v1329_v55 = vadd.f32 %v1328_v32, %v1327_v24 }
 0x4c3   : > { %v1326_v50 = vadd.f32 0.5, %v1325_v57 }
 0x4c4   : > { %1990 = vtanh.f32 %v1329_v55 }
 0x4ca   : > { %v1991_v42 = vpop.eup %1990 }
 0x4cb   : > { %v1331_v30 = vmul.f32 %v1991_v42, %v1326_v50 }
 0x4cd   : > { %v1341_v36 = vpack.c.bf16 %v1331_v30, %v1331_v30 }
 0x4cf   : > { %1350 = vmatmul.bf16.vlgmr.msra.gmra.mxu0 %v1341_v36  ;;  %1363 = vmatmul.bf16.vlgmr.msrb.gmra.mxu1 %v1341_v36 }
 0x4d0   : > { %1376 = vmatmul.bf16.vlgmr.msra.gmra.mxu2 %v1341_v36  ;;  %1389 = vmatmul.bf16.vlgmr.msra.gmra.mxu3 %v1341_v36 }
 0x54c   : > { %v1351_v7 = vpop.f32.mrf.mxu0  ;;  %v1364_v10 = vpop.f32.mrf.mxu1 }
 0x54d   : > { %v1394_v11 = vadd.f32 %v1351_v7, %v1337_v1  ;;  %v1395_v12 = vadd.f32 %v1364_v10, %v1338_v2 }
 0x54f   : > { %1992 = vtanh.f32 %v1394_v11 }
 0x550   : > { %1994 = vtanh.f32 %v1395_v12 }
 0x553   : > { %v1377_v25 = vpop.f32.mrf.mxu2  ;;  %v1390_v33 = vpop.f32.mrf.mxu3 }
 0x554   : > { %v1396_v38 = vadd.f32 %v1377_v25, %v1339_v19  ;;  %v1353_v41 = vpop.f32.mrf.mxu0  ;;  %v1366_v45 = vpop.f32.mrf.mxu1  ;;  %v1397_v52 = vadd.f32 %v1390_v33, %v1340_v20 }
 0x555   : > { %v1993_v51 = vpop.eup %1992 }
 0x556   : > { %v1995_v56 = vpop.eup %1994  ;;  %1996 = vtanh.f32 %v1396_v38  ;;  %v1402_v21 = vmul.f32 0.5, %v1993_v51 }
 0x557   : > { %v1404_v0 = vmul.f32 0.5, %v1995_v56  ;;  %1998 = vtanh.f32 %v1397_v52 }
 0x558   : > { %v1403_v4 = vadd.f32 0.5, %v1402_v21 }
 0x559   : > { %v1405_v3 = vadd.f32 0.5, %v1404_v0 }
 0x55b   : > { %v1379_v9 = vpop.f32.mrf.mxu2  ;;  %v1392_v16 = vpop.f32.mrf.mxu3  ;;  %v1408_v44 = vmul.f32 %v1405_v3, %v1329_v55 }
 0x55c   : > { %v1997_v63 = vpop.eup %1996 }
 0x55d   : > { %v1409_v61 = vmul.f32 %v1997_v63, %v1403_v4  ;;  %v1999_v47 = vpop.eup %1998 }
 0x55e   : > { %v1406_v15 = vmul.f32 0.5, %v1999_v47 }
 0x55f   : > { %v1410_v58 = vadd.f32 %v1409_v61, %v1408_v44 }
 0x560   : > { %v1407_v43 = vadd.f32 0.5, %v1406_v15 }
 0x561   : > { %2000 = vtanh.f32 %v1410_v58 }
 0x567   : > { %v2001_v23 = vpop.eup %2000 }
 0x568   : > { %v1412_v60 = vmul.f32 %v2001_v23, %v1407_v43 }
 0x56a   : > { %v1413_v5 = vpack.c.bf16 %v1412_v60, %v1412_v60 }
 0x56c   : > { %1490 = vmatmul.bf16.vlgmr.msrb.gmra.mxu0 %v1413_v5 }
 0x5e9   : > { %v1491_v14 = vpop.f32.mrf.mxu0 }
 0x5ea   : > { %v1492_v29 = vadd.f32 %v1921_v22, %v1491_v14 }
 0x5ec   : > { %1495 = vst [vmem:[%s337_s10] sm:$0xff] %v1492_v29 }
 0x5ed   : > { %2059 = shalt.err (!%p2056_p9)
}
 0x5ee   : > { %1871 = dma.vmem_to_hbm [thread:$0]  (%p2183_p6), %s1510_s14, 128, %s1512_s15, %s1497_s13  }
 0x5f1   : > { %v1493_v48 = vpop.f32.mrf.mxu0 }
 0x5f2 PF: > { %s1523_s7 = sand.u32 1, %s2086_s21   ;;  %p1878_p11 = pnand %p1599_p1, %p2189_p10 }
 0x5f3   : > { %s1524_s28 = scalar_lea.sflag [#allocation6], %s1523_s7 }
 0x5f4   : > { %p1879_p12 = pneg %p1878_p11 }
 0x5f6   : > { %2081 = dma.done.wait (%p1879_p12), %s1524_s28, 128  }
 0x5f7   : > { %2083 = vsyncadd (%p1879_p12), %s1524_s28, 4294967168  ;;  %p17_p13 = scmp.ge.s32.totalorder %s2165_s27, 4   ;;  %s2825_s21 = smov %s2090_s22 }
 0x5f8   : > { %s2826_s22 = smov %s2094_s23  ;;  %s2827_s23 = smov %s2177_s30 }
 0x5f9   : > { %s2828_s24 = smov %s2165_s27  ;;  %19 = sbr.rel (!%p17_p13) target bundleno = 4 (0x4), region = 138 }
 0x5fe   :  { %1530 = vsyncpa [#allocation5], 1 }
 0x5ff   :  { %1532 = vsyncpa [#allocation5 + $0x1], 1 }
 0x600   :  { %1533 = vsyncpa [#allocation6], 1 }
 0x601   :  { %1535 = vsyncpa [#allocation6 + $0x1], 1 }

</bundles_post_ra>
